<compile_context>
chip_gen: v6e
topology: v6e:2x2x1
jax: 0.10.0
libtpu: 0.0.40
codegen_flags: <defaults>
</compile_context>

<pallas_src>
import functools

import jax
import jax.numpy as jnp
from jax import lax
from jax.experimental import pallas as pl
from jax.experimental.pallas import tpu as pltpu


def _layernorm(h, g, b, eps):
    mean = jnp.mean(h, axis=-1, keepdims=True)
    var = jnp.mean((h - mean) ** 2, axis=-1, keepdims=True)
    return (h - mean) * lax.rsqrt(var + eps) * g + b


def transformer_block_kernel(
    x_ref,
    g1_ref, b1_ref,
    wq_ref, bq_ref, wk_ref, bk_ref, wv_ref, bv_ref,
    wo_ref, bo_ref,
    g2_ref, b2_ref,
    w1_ref, bf1_ref, w2_ref, bf2_ref, w3_ref, bf3_ref,
    o_ref,
    *, num_heads, head_dim, eps,
):
    f32 = jnp.float32
    bf16 = jnp.bfloat16

    x = x_ref[0].astype(f32)                       # (T, E) residual stream, f32
    T, E = x.shape

    # ---------------- attention branch: x + MHA(LN1(x)) ----------------
    h = _layernorm(x, g1_ref[...], b1_ref[...], eps)                 # (T, E) f32
    hb = jnp.broadcast_to(h.astype(bf16)[None], (num_heads, T, E))   # (H, T, E) bf16

    # head-batched projections: bf16 x bf16 -> f32 accumulate on the MXU
    q = jnp.einsum("hte,hed->htd", hb, wq_ref[...],
                   preferred_element_type=f32) + bq_ref[...]         # (H, T, d)
    k = jnp.einsum("hte,hed->htd", hb, wk_ref[...],
                   preferred_element_type=f32) + bk_ref[...]
    v = jnp.einsum("hte,hed->htd", hb, wv_ref[...],
                   preferred_element_type=f32) + bv_ref[...]

    q = q * (1.0 / (head_dim ** 0.5))   # fold softmax scale into q once

    scores = jnp.einsum("hqd,hkd->hqk", q.astype(bf16), k.astype(bf16),
                        preferred_element_type=f32)                  # (H, T, T)

    row = lax.broadcasted_iota(jnp.int32, (num_heads, T, T), 1)
    col = lax.broadcasted_iota(jnp.int32, (num_heads, T, T), 2)
    scores = jnp.where(col <= row, scores, -1e30)                    # causal mask

    scores = scores - jnp.max(scores, axis=-1, keepdims=True)        # f32 softmax
    p = jnp.exp(scores)
    p = p * pl.reciprocal(jnp.sum(p, axis=-1, keepdims=True), approx=True)
    # TODO(synk): for production T (>=128) tile keys flash-style (online softmax)
    # and skip fully-masked (q-tile, k-tile) pairs instead of dense (T, T) scores.

    ctx = jnp.einsum("hqk,hkd->hqd", p.astype(bf16), v.astype(bf16),
                     preferred_element_type=f32)                     # (H, T, d)
    attn = jnp.sum(
        jnp.einsum("htd,hde->hte", ctx.astype(bf16), wo_ref[...],
                   preferred_element_type=f32),
        axis=0) + bo_ref[...]                                        # (T, E)
    # TODO(synk): attention dropout omitted (identity in eval mode).
    x = x + attn

    # ---------------- MLP branch: x + MLP(LN2(x)) ----------------
    hm = _layernorm(x, g2_ref[...], b2_ref[...], eps).astype(bf16)
    f = jnp.maximum(
        jnp.dot(hm, w1_ref[...], preferred_element_type=f32) + bf1_ref[...], 0.0)
    f = jnp.maximum(
        jnp.dot(f.astype(bf16), w2_ref[...], preferred_element_type=f32)
        + bf2_ref[...], 0.0)
    f = jnp.dot(f.astype(bf16), w3_ref[...], preferred_element_type=f32) + bf3_ref[...]
    # TODO(synk): MLP dropout (p=0.2) omitted (identity in eval mode).
    # TODO(synk): on v7x at large E, tile the (4E,4E) w2 matmul over a K/N grid
    # axis with a VMEM accumulator instead of keeping it whole-resident.
    x = x + f

    o_ref[0] = x.astype(o_ref.dtype)


def _index_full_2d(b):
    return (0, 0)


def _index_full_3d(b):
    return (0, 0, 0)


def transformer_block(x, kparams, *, num_heads, eps=1e-5):
    B, T, E = x.shape
    head_dim = E // num_heads

    kernel = functools.partial(
        transformer_block_kernel,
        num_heads=num_heads, head_dim=head_dim, eps=eps)

    def build_call(optimized):
        in_specs = [pl.BlockSpec((1, T, E), lambda b: (b, 0, 0))]
        for p in kparams:
            idx_map = _index_full_3d if p.ndim == 3 else _index_full_2d
            if optimized:
                # Weights/biases are grid-invariant: single-buffer them in VMEM.
                spec = pl.BlockSpec(p.shape, idx_map, pipeline_mode=pl.Buffered(1))
            else:
                spec = pl.BlockSpec(p.shape, idx_map)
            in_specs.append(spec)

        if optimized:
            compiler_params = pltpu.CompilerParams(
                dimension_semantics=("parallel",),
                # Portable across v5e/v6e/v7x; raise toward 96-112 MiB on
                # v5e/v6e when keeping large-E weights resident.
                vmem_limit_bytes=48 * 1024 * 1024)
        else:
            compiler_params = pltpu.CompilerParams(
                dimension_semantics=("parallel",))

        return pl.pallas_call(
            kernel,
            out_shape=jax.ShapeDtypeStruct((B, T, E), x.dtype),
            grid_spec=pltpu.PrefetchScalarGridSpec(
                num_scalar_prefetch=0,
                grid=(B,),
                in_specs=in_specs,
                out_specs=pl.BlockSpec((1, T, E), lambda b: (b, 0, 0)),
            ),
            compiler_params=compiler_params,
        )

    try:
        return build_call(True)(x, *kparams)
    except Exception:
        # TODO(synk): pipeline_mode=pl.Buffered(1) / vmem_limit not accepted on
        # this jax build -- fall back to default double-buffered configuration.
        return build_call(False)(x, *kparams)


# ---------------------------------------------------------------------------
# Parameters: PyTorch-style layout (f32) + host-side re-layout for the kernel.
# ---------------------------------------------------------------------------
def init_params(key, embed_dim):
    E = embed_dim
    H4 = 4 * E
    ks = jax.random.split(key, 8)
    s = 0.02

    def mat(k, shape):
        return jax.random.normal(k, shape, jnp.float32) * s

    g1 = jnp.ones((1, E), jnp.float32)
    b1 = jnp.zeros((1, E), jnp.float32)
    g2 = jnp.ones((1, E), jnp.float32)
    b2 = jnp.zeros((1, E), jnp.float32)

    wq, wk, wv, wo = (mat(ks[i], (E, E)) for i in range(4))
    bq = jnp.zeros((1, E), jnp.float32)
    bk = jnp.zeros((1, E), jnp.float32)
    bv = jnp.zeros((1, E), jnp.float32)
    bo = jnp.zeros((1, E), jnp.float32)

    w1 = mat(ks[4], (E, H4))
    bf1 = jnp.zeros((1, H4), jnp.float32)
    w2 = mat(ks[5], (H4, H4))
    bf2 = jnp.zeros((1, H4), jnp.float32)
    w3 = mat(ks[6], (H4, E))
    bf3 = jnp.zeros((1, E), jnp.float32)

    return [g1, b1, wq, bq, wk, bk, wv, bv, wo, bo,
            g2, b2, w1, bf1, w2, bf2, w3, bf3]


def prepare_kernel_params(params, num_heads):
    """One-time host-side re-layout: split QKV/out-proj weights per head and
    store all matmul weights in bf16 (LN params and biases stay f32)."""
    (g1, b1, wq, bq, wk, bk, wv, bv, wo, bo,
     g2, b2, w1, bf1, w2, bf2, w3, bf3) = params
    E = wq.shape[0]
    H = num_heads
    d = E // H
    bf16 = jnp.bfloat16

    def split_in(w):      # (E, E) -> (H, E, d): per-head output columns
        return w.reshape(E, H, d).transpose(1, 0, 2).astype(bf16)

    def split_bias(b):    # (1, E) -> (H, 1, d)
        return b.reshape(H, d)[:, None, :].astype(jnp.float32)

    return [
        g1, b1,
        split_in(wq), split_bias(bq),
        split_in(wk), split_bias(bk),
        split_in(wv), split_bias(bv),
        wo.reshape(H, d, E).astype(bf16), bo,
        g2, b2,
        w1.astype(bf16), bf1,
        w2.astype(bf16), bf2,
        w3.astype(bf16), bf3,
    ]


# ---------------------------------------------------------------------------
# Pure-JAX f32 reference (same math, original param layout).
# ---------------------------------------------------------------------------
def reference_block(x, params, *, num_heads, eps=1e-5):
    (g1, b1, wq, bq, wk, bk, wv, bv, wo, bo,
     g2, b2, w1, bf1, w2, bf2, w3, bf3) = params
    B, T, E = x.shape
    hd = E // num_heads

    def ln(h, g, b):
        m = jnp.mean(h, axis=-1, keepdims=True)
        v = jnp.mean((h - m) ** 2, axis=-1, keepdims=True)
        return (h - m) / jnp.sqrt(v + eps) * g + b

    h = ln(x, g1, b1)
    q = h @ wq + bq
    k = h @ wk + bk
    v = h @ wv + bv
    q = q.reshape(B, T, num_heads, hd).transpose(0, 2, 1, 3)
    k = k.reshape(B, T, num_heads, hd).transpose(0, 2, 1, 3)
    v = v.reshape(B, T, num_heads, hd).transpose(0, 2, 1, 3)
    scores = jnp.einsum("bhqd,bhkd->bhqk", q, k) / (hd ** 0.5)
    mask = jnp.tril(jnp.ones((T, T), bool))
    scores = jnp.where(mask, scores, -1e30)
    p = jax.nn.softmax(scores, axis=-1)
    a = jnp.einsum("bhqk,bhkd->bhqd", p, v).transpose(0, 2, 1, 3).reshape(B, T, E)
    x = x + (a @ wo + bo)

    h = ln(x, g2, b2)
    h = jax.nn.relu(h @ w1 + bf1)
    h = jax.nn.relu(h @ w2 + bf2)
    h = h @ w3 + bf3
    return x + h


if __name__ == "__main__":
    # TransformerBlock(num_heads=4, embed_dim=32, vocab_size=64,
    #                  batch_size=2, tokens_per_batch=8)
    B, T, E, NUM_HEADS = 2, 8, 32, 4

    key = jax.random.PRNGKey(0)
    k_x, k_p = jax.random.split(key)
    x = jax.random.normal(k_x, (B, T, E), jnp.float32)
    params = init_params(k_p, E)
    kparams = prepare_kernel_params(params, NUM_HEADS)

    out = transformer_block(x, kparams, num_heads=NUM_HEADS)
    out = jax.block_until_ready(out)

    ref = reference_block(x, params, num_heads=NUM_HEADS)
    assert out.shape == (B, T, E)
    assert jnp.allclose(out, ref, atol=3e-3, rtol=3e-3), "mismatch vs reference"

    print("KERNEL_OK")
</pallas_src>

<mosaic_0001>
module attributes {stable_mosaic.version = 11 : i64} {
  func.func @transformer_block_kernel(%arg0: i32, %arg1: memref<1x8x32xf32, #tpu.memory_space<vmem>>, %arg2: memref<1x32xf32, #tpu.memory_space<vmem>>, %arg3: memref<1x32xf32, #tpu.memory_space<vmem>>, %arg4: memref<4x32x8xbf16, #tpu.memory_space<vmem>>, %arg5: memref<4x1x8xf32, #tpu.memory_space<vmem>>, %arg6: memref<4x32x8xbf16, #tpu.memory_space<vmem>>, %arg7: memref<4x1x8xf32, #tpu.memory_space<vmem>>, %arg8: memref<4x32x8xbf16, #tpu.memory_space<vmem>>, %arg9: memref<4x1x8xf32, #tpu.memory_space<vmem>>, %arg10: memref<4x8x32xbf16, #tpu.memory_space<vmem>>, %arg11: memref<1x32xf32, #tpu.memory_space<vmem>>, %arg12: memref<1x32xf32, #tpu.memory_space<vmem>>, %arg13: memref<1x32xf32, #tpu.memory_space<vmem>>, %arg14: memref<32x128xbf16, #tpu.memory_space<vmem>>, %arg15: memref<1x128xf32, #tpu.memory_space<vmem>>, %arg16: memref<128x128xbf16, #tpu.memory_space<vmem>>, %arg17: memref<1x128xf32, #tpu.memory_space<vmem>>, %arg18: memref<128x32xbf16, #tpu.memory_space<vmem>>, %arg19: memref<1x32xf32, #tpu.memory_space<vmem>>, %arg20: memref<1x8x32xf32, #tpu.memory_space<vmem>>) attributes {dimension_semantics = [#tpu.dimension_semantics<parallel>], iteration_bounds = array<i64: 2>, scalar_prefetch = 0 : i64, scratch_operands = 0 : i64, tpu.core_type = #tpu.core_type<tc>, window_params = [{transform_indices = @transform_0, window_bounds = array<i64: 1, 8, 32>}, {pipeline_mode = #tpu.pipeline_mode<synchronous>, transform_indices = @transform_1, window_bounds = array<i64: 1, 32>}, {pipeline_mode = #tpu.pipeline_mode<synchronous>, transform_indices = @transform_2, window_bounds = array<i64: 1, 32>}, {pipeline_mode = #tpu.pipeline_mode<synchronous>, transform_indices = @transform_3, window_bounds = array<i64: 4, 32, 8>}, {pipeline_mode = #tpu.pipeline_mode<synchronous>, transform_indices = @transform_4, window_bounds = array<i64: 4, 1, 8>}, {pipeline_mode = #tpu.pipeline_mode<synchronous>, transform_indices = @transform_5, window_bounds = array<i64: 4, 32, 8>}, {pipeline_mode = #tpu.pipeline_mode<synchronous>, transform_indices = @transform_6, window_bounds = array<i64: 4, 1, 8>}, {pipeline_mode = #tpu.pipeline_mode<synchronous>, transform_indices = @transform_7, window_bounds = array<i64: 4, 32, 8>}, {pipeline_mode = #tpu.pipeline_mode<synchronous>, transform_indices = @transform_8, window_bounds = array<i64: 4, 1, 8>}, {pipeline_mode = #tpu.pipeline_mode<synchronous>, transform_indices = @transform_9, window_bounds = array<i64: 4, 8, 32>}, {pipeline_mode = #tpu.pipeline_mode<synchronous>, transform_indices = @transform_10, window_bounds = array<i64: 1, 32>}, {pipeline_mode = #tpu.pipeline_mode<synchronous>, transform_indices = @transform_11, window_bounds = array<i64: 1, 32>}, {pipeline_mode = #tpu.pipeline_mode<synchronous>, transform_indices = @transform_12, window_bounds = array<i64: 1, 32>}, {pipeline_mode = #tpu.pipeline_mode<synchronous>, transform_indices = @transform_13, window_bounds = array<i64: 32, 128>}, {pipeline_mode = #tpu.pipeline_mode<synchronous>, transform_indices = @transform_14, window_bounds = array<i64: 1, 128>}, {pipeline_mode = #tpu.pipeline_mode<synchronous>, transform_indices = @transform_15, window_bounds = array<i64: 128, 128>}, {pipeline_mode = #tpu.pipeline_mode<synchronous>, transform_indices = @transform_16, window_bounds = array<i64: 1, 128>}, {pipeline_mode = #tpu.pipeline_mode<synchronous>, transform_indices = @transform_17, window_bounds = array<i64: 128, 32>}, {pipeline_mode = #tpu.pipeline_mode<synchronous>, transform_indices = @transform_18, window_bounds = array<i64: 1, 32>}, {transform_indices = @transform_19, window_bounds = array<i64: 1, 8, 32>}]} {
    %c0 = arith.constant 0 : index
    %c0_0 = arith.constant 0 : index
    %c0_1 = arith.constant 0 : index
    %0 = vector.load %arg1[%c0, %c0_0, %c0_1] : memref<1x8x32xf32, #tpu.memory_space<vmem>>, vector<1x8x32xf32>
    %1 = vector.shape_cast %0 : vector<1x8x32xf32> to vector<8x32xf32>
    %c0_2 = arith.constant 0 : index
    %c0_3 = arith.constant 0 : index
    %2 = vector.load %arg2[%c0_2, %c0_3] : memref<1x32xf32, #tpu.memory_space<vmem>>, vector<1x32xf32>
    %c0_4 = arith.constant 0 : index
    %c0_5 = arith.constant 0 : index
    %3 = vector.load %arg3[%c0_4, %c0_5] : memref<1x32xf32, #tpu.memory_space<vmem>>, vector<1x32xf32>
    %cst = arith.constant dense<0.000000e+00> : vector<8xf32>
    %4 = vector.multi_reduction <add>, %1, %cst [1] : vector<8x32xf32> to vector<8xf32>
    %5 = vector.shape_cast %4 : vector<8xf32> to vector<8x1xf32>
    %cst_6 = arith.constant 3.200000e+01 : f32
    %6 = vector.broadcast %cst_6 : f32 to vector<8x1xf32>
    %7 = arith.divf %5, %6 : vector<8x1xf32>
    %8 = vector.broadcast %7 : vector<8x1xf32> to vector<8x32xf32>
    %9 = arith.subf %1, %8 : vector<8x32xf32>
    %10 = arith.mulf %9, %9 : vector<8x32xf32>
    %cst_7 = arith.constant dense<0.000000e+00> : vector<8xf32>
    %11 = vector.multi_reduction <add>, %10, %cst_7 [1] : vector<8x32xf32> to vector<8xf32>
    %12 = vector.shape_cast %11 : vector<8xf32> to vector<8x1xf32>
    %cst_8 = arith.constant 3.200000e+01 : f32
    %13 = vector.broadcast %cst_8 : f32 to vector<8x1xf32>
    %14 = arith.divf %12, %13 : vector<8x1xf32>
    %15 = vector.broadcast %7 : vector<8x1xf32> to vector<8x32xf32>
    %16 = arith.subf %1, %15 : vector<8x32xf32>
    %cst_9 = arith.constant 9.99999974E-6 : f32
    %17 = vector.broadcast %cst_9 : f32 to vector<8x1xf32>
    %18 = arith.addf %14, %17 : vector<8x1xf32>
    %19 = math.rsqrt %18 : vector<8x1xf32>
    %20 = vector.broadcast %19 : vector<8x1xf32> to vector<8x32xf32>
    %21 = arith.mulf %16, %20 : vector<8x32xf32>
    %22 = vector.broadcast %2 : vector<1x32xf32> to vector<8x32xf32>
    %23 = arith.mulf %21, %22 : vector<8x32xf32>
    %24 = vector.broadcast %3 : vector<1x32xf32> to vector<8x32xf32>
    %25 = arith.addf %23, %24 : vector<8x32xf32>
    %26 = arith.truncf %25 : vector<8x32xf32> to vector<8x32xbf16>
    %27 = vector.shape_cast %26 : vector<8x32xbf16> to vector<1x8x32xbf16>
    %28 = vector.shape_cast %27 : vector<1x8x32xbf16> to vector<1x8x32xbf16>
    %29 = vector.broadcast %28 : vector<1x8x32xbf16> to vector<4x8x32xbf16>
    %c0_10 = arith.constant 0 : index
    %c0_11 = arith.constant 0 : index
    %c0_12 = arith.constant 0 : index
    %30 = vector.load %arg4[%c0_10, %c0_11, %c0_12] : memref<4x32x8xbf16, #tpu.memory_space<vmem>>, vector<4x32x8xbf16>
    "tpu.trace_start"() <{level = 10 : i32, message = "hte,hed->htd"}> : () -> ()
    %cst_13 = arith.constant dense<0.000000e+00> : vector<4x8x8xf32>
    %31 = tpu.matmul %29, %30, %cst_13 {dimension_numbers = #tpu.dot_dimension_numbers<[2], [1], [1], [2], [0, 0, 0, 1, 1, 2], [0], [0]>} : vector<4x8x32xbf16>, vector<4x32x8xbf16>, vector<4x8x8xf32> -> vector<4x8x8xf32>
    "tpu.trace_stop"() : () -> ()
    %c0_14 = arith.constant 0 : index
    %c0_15 = arith.constant 0 : index
    %c0_16 = arith.constant 0 : index
    %32 = vector.load %arg5[%c0_14, %c0_15, %c0_16] : memref<4x1x8xf32, #tpu.memory_space<vmem>>, vector<4x1x8xf32>
    %33 = vector.broadcast %32 : vector<4x1x8xf32> to vector<4x8x8xf32>
    %34 = arith.addf %31, %33 : vector<4x8x8xf32>
    %c0_17 = arith.constant 0 : index
    %c0_18 = arith.constant 0 : index
    %c0_19 = arith.constant 0 : index
    %35 = vector.load %arg6[%c0_17, %c0_18, %c0_19] : memref<4x32x8xbf16, #tpu.memory_space<vmem>>, vector<4x32x8xbf16>
    "tpu.trace_start"() <{level = 10 : i32, message = "hte,hed->htd"}> : () -> ()
    %cst_20 = arith.constant dense<0.000000e+00> : vector<4x8x8xf32>
    %36 = tpu.matmul %29, %35, %cst_20 {dimension_numbers = #tpu.dot_dimension_numbers<[2], [1], [1], [2], [0, 0, 0, 1, 1, 2], [0], [0]>} : vector<4x8x32xbf16>, vector<4x32x8xbf16>, vector<4x8x8xf32> -> vector<4x8x8xf32>
    "tpu.trace_stop"() : () -> ()
    %c0_21 = arith.constant 0 : index
    %c0_22 = arith.constant 0 : index
    %c0_23 = arith.constant 0 : index
    %37 = vector.load %arg7[%c0_21, %c0_22, %c0_23] : memref<4x1x8xf32, #tpu.memory_space<vmem>>, vector<4x1x8xf32>
    %38 = vector.broadcast %37 : vector<4x1x8xf32> to vector<4x8x8xf32>
    %39 = arith.addf %36, %38 : vector<4x8x8xf32>
    %c0_24 = arith.constant 0 : index
    %c0_25 = arith.constant 0 : index
    %c0_26 = arith.constant 0 : index
    %40 = vector.load %arg8[%c0_24, %c0_25, %c0_26] : memref<4x32x8xbf16, #tpu.memory_space<vmem>>, vector<4x32x8xbf16>
    "tpu.trace_start"() <{level = 10 : i32, message = "hte,hed->htd"}> : () -> ()
    %cst_27 = arith.constant dense<0.000000e+00> : vector<4x8x8xf32>
    %41 = tpu.matmul %29, %40, %cst_27 {dimension_numbers = #tpu.dot_dimension_numbers<[2], [1], [1], [2], [0, 0, 0, 1, 1, 2], [0], [0]>} : vector<4x8x32xbf16>, vector<4x32x8xbf16>, vector<4x8x8xf32> -> vector<4x8x8xf32>
    "tpu.trace_stop"() : () -> ()
    %c0_28 = arith.constant 0 : index
    %c0_29 = arith.constant 0 : index
    %c0_30 = arith.constant 0 : index
    %42 = vector.load %arg9[%c0_28, %c0_29, %c0_30] : memref<4x1x8xf32, #tpu.memory_space<vmem>>, vector<4x1x8xf32>
    %43 = vector.broadcast %42 : vector<4x1x8xf32> to vector<4x8x8xf32>
    %44 = arith.addf %41, %43 : vector<4x8x8xf32>
    %cst_31 = arith.constant 0.353553385 : f32
    %45 = vector.broadcast %cst_31 : f32 to vector<4x8x8xf32>
    %46 = arith.mulf %34, %45 : vector<4x8x8xf32>
    %47 = arith.truncf %46 : vector<4x8x8xf32> to vector<4x8x8xbf16>
    %48 = arith.truncf %39 : vector<4x8x8xf32> to vector<4x8x8xbf16>
    "tpu.trace_start"() <{level = 10 : i32, message = "hqd,hkd->hqk"}> : () -> ()
    %cst_32 = arith.constant dense<0.000000e+00> : vector<4x8x8xf32>
    %49 = tpu.matmul %47, %48, %cst_32 {dimension_numbers = #tpu.dot_dimension_numbers<[2], [2], [1], [1], [0, 0, 0, 1, 1, 1], [0], [0]>} : vector<4x8x8xbf16>, vector<4x8x8xbf16>, vector<4x8x8xf32> -> vector<4x8x8xf32>
    "tpu.trace_stop"() : () -> ()
    %50 = tpu.iota {dimensions = array<i32: 1>} : vector<4x8x8xi32>
    %51 = tpu.iota {dimensions = array<i32: 2>} : vector<4x8x8xi32>
    %52 = arith.cmpi sle, %51, %50 : vector<4x8x8xi32>
    %cst_33 = arith.constant -1.000000e+30 : f32
    %53 = vector.broadcast %cst_33 : f32 to vector<4x8x8xf32>
    %54 = arith.select %52, %49, %53 : vector<4x8x8xi1>, vector<4x8x8xf32>
    %cst_34 = arith.constant dense<0xFF800000> : vector<4x8xf32>
    %55 = vector.multi_reduction <maximumf>, %54, %cst_34 [2] : vector<4x8x8xf32> to vector<4x8xf32>
    %56 = vector.shape_cast %55 : vector<4x8xf32> to vector<4x8x1xf32>
    %57 = vector.broadcast %56 : vector<4x8x1xf32> to vector<4x8x8xf32>
    %58 = arith.subf %54, %57 : vector<4x8x8xf32>
    %59 = math.exp %58 : vector<4x8x8xf32>
    %cst_35 = arith.constant dense<0.000000e+00> : vector<4x8xf32>
    %60 = vector.multi_reduction <add>, %59, %cst_35 [2] : vector<4x8x8xf32> to vector<4x8xf32>
    %61 = vector.shape_cast %60 : vector<4x8xf32> to vector<4x8x1xf32>
    %62 = tpu.reciprocal %61 {approx = true} : vector<4x8x1xf32> -> vector<4x8x1xf32>
    %63 = vector.broadcast %62 : vector<4x8x1xf32> to vector<4x8x8xf32>
    %64 = arith.mulf %59, %63 : vector<4x8x8xf32>
    %65 = arith.truncf %64 : vector<4x8x8xf32> to vector<4x8x8xbf16>
    %66 = arith.truncf %44 : vector<4x8x8xf32> to vector<4x8x8xbf16>
    "tpu.trace_start"() <{level = 10 : i32, message = "hqk,hkd->hqd"}> : () -> ()
    %cst_36 = arith.constant dense<0.000000e+00> : vector<4x8x8xf32>
    %67 = tpu.matmul %65, %66, %cst_36 {dimension_numbers = #tpu.dot_dimension_numbers<[2], [1], [1], [2], [0, 0, 0, 1, 1, 2], [0], [0]>} : vector<4x8x8xbf16>, vector<4x8x8xbf16>, vector<4x8x8xf32> -> vector<4x8x8xf32>
    "tpu.trace_stop"() : () -> ()
    %68 = arith.truncf %67 : vector<4x8x8xf32> to vector<4x8x8xbf16>
    %c0_37 = arith.constant 0 : index
    %c0_38 = arith.constant 0 : index
    %c0_39 = arith.constant 0 : index
    %69 = vector.load %arg10[%c0_37, %c0_38, %c0_39] : memref<4x8x32xbf16, #tpu.memory_space<vmem>>, vector<4x8x32xbf16>
    "tpu.trace_start"() <{level = 10 : i32, message = "htd,hde->hte"}> : () -> ()
    %cst_40 = arith.constant dense<0.000000e+00> : vector<4x8x32xf32>
    %70 = tpu.matmul %68, %69, %cst_40 {dimension_numbers = #tpu.dot_dimension_numbers<[2], [1], [1], [2], [0, 0, 0, 1, 1, 2], [0], [0]>} : vector<4x8x8xbf16>, vector<4x8x32xbf16>, vector<4x8x32xf32> -> vector<4x8x32xf32>
    "tpu.trace_stop"() : () -> ()
    %cst_41 = arith.constant dense<0.000000e+00> : vector<8x32xf32>
    %71 = vector.multi_reduction <add>, %70, %cst_41 [0] : vector<4x8x32xf32> to vector<8x32xf32>
    %c0_42 = arith.constant 0 : index
    %c0_43 = arith.constant 0 : index
    %72 = vector.load %arg11[%c0_42, %c0_43] : memref<1x32xf32, #tpu.memory_space<vmem>>, vector<1x32xf32>
    %73 = vector.broadcast %72 : vector<1x32xf32> to vector<8x32xf32>
    %74 = arith.addf %71, %73 : vector<8x32xf32>
    %75 = arith.addf %1, %74 : vector<8x32xf32>
    %c0_44 = arith.constant 0 : index
    %c0_45 = arith.constant 0 : index
    %76 = vector.load %arg12[%c0_44, %c0_45] : memref<1x32xf32, #tpu.memory_space<vmem>>, vector<1x32xf32>
    %c0_46 = arith.constant 0 : index
    %c0_47 = arith.constant 0 : index
    %77 = vector.load %arg13[%c0_46, %c0_47] : memref<1x32xf32, #tpu.memory_space<vmem>>, vector<1x32xf32>
    %cst_48 = arith.constant dense<0.000000e+00> : vector<8xf32>
    %78 = vector.multi_reduction <add>, %75, %cst_48 [1] : vector<8x32xf32> to vector<8xf32>
    %79 = vector.shape_cast %78 : vector<8xf32> to vector<8x1xf32>
    %cst_49 = arith.constant 3.200000e+01 : f32
    %80 = vector.broadcast %cst_49 : f32 to vector<8x1xf32>
    %81 = arith.divf %79, %80 : vector<8x1xf32>
    %82 = vector.broadcast %81 : vector<8x1xf32> to vector<8x32xf32>
    %83 = arith.subf %75, %82 : vector<8x32xf32>
    %84 = arith.mulf %83, %83 : vector<8x32xf32>
    %cst_50 = arith.constant dense<0.000000e+00> : vector<8xf32>
    %85 = vector.multi_reduction <add>, %84, %cst_50 [1] : vector<8x32xf32> to vector<8xf32>
    %86 = vector.shape_cast %85 : vector<8xf32> to vector<8x1xf32>
    %cst_51 = arith.constant 3.200000e+01 : f32
    %87 = vector.broadcast %cst_51 : f32 to vector<8x1xf32>
    %88 = arith.divf %86, %87 : vector<8x1xf32>
    %89 = vector.broadcast %81 : vector<8x1xf32> to vector<8x32xf32>
    %90 = arith.subf %75, %89 : vector<8x32xf32>
    %cst_52 = arith.constant 9.99999974E-6 : f32
    %91 = vector.broadcast %cst_52 : f32 to vector<8x1xf32>
    %92 = arith.addf %88, %91 : vector<8x1xf32>
    %93 = math.rsqrt %92 : vector<8x1xf32>
    %94 = vector.broadcast %93 : vector<8x1xf32> to vector<8x32xf32>
    %95 = arith.mulf %90, %94 : vector<8x32xf32>
    %96 = vector.broadcast %76 : vector<1x32xf32> to vector<8x32xf32>
    %97 = arith.mulf %95, %96 : vector<8x32xf32>
    %98 = vector.broadcast %77 : vector<1x32xf32> to vector<8x32xf32>
    %99 = arith.addf %97, %98 : vector<8x32xf32>
    %100 = arith.truncf %99 : vector<8x32xf32> to vector<8x32xbf16>
    %c0_53 = arith.constant 0 : index
    %c0_54 = arith.constant 0 : index
    %101 = vector.load %arg14[%c0_53, %c0_54] : memref<32x128xbf16, #tpu.memory_space<vmem>>, vector<32x128xbf16>
    %cst_55 = arith.constant dense<0.000000e+00> : vector<8x128xf32>
    %102 = tpu.matmul %100, %101, %cst_55 {dimension_numbers = #tpu.dot_dimension_numbers<[1], [0], [0], [1], [0, 0, 1, 1], [], []>} : vector<8x32xbf16>, vector<32x128xbf16>, vector<8x128xf32> -> vector<8x128xf32>
    %c0_56 = arith.constant 0 : index
    %c0_57 = arith.constant 0 : index
    %103 = vector.load %arg15[%c0_56, %c0_57] : memref<1x128xf32, #tpu.memory_space<vmem>>, vector<1x128xf32>
    %104 = vector.broadcast %103 : vector<1x128xf32> to vector<8x128xf32>
    %105 = arith.addf %102, %104 : vector<8x128xf32>
    %cst_58 = arith.constant 0.000000e+00 : f32
    %106 = vector.broadcast %cst_58 : f32 to vector<8x128xf32>
    %107 = arith.maximumf %105, %106 : vector<8x128xf32>
    %108 = arith.truncf %107 : vector<8x128xf32> to vector<8x128xbf16>
    %c0_59 = arith.constant 0 : index
    %c0_60 = arith.constant 0 : index
    %109 = vector.load %arg16[%c0_59, %c0_60] : memref<128x128xbf16, #tpu.memory_space<vmem>>, vector<128x128xbf16>
    %cst_61 = arith.constant dense<0.000000e+00> : vector<8x128xf32>
    %110 = tpu.matmul %108, %109, %cst_61 {dimension_numbers = #tpu.dot_dimension_numbers<[1], [0], [0], [1], [0, 0, 1, 1], [], []>} : vector<8x128xbf16>, vector<128x128xbf16>, vector<8x128xf32> -> vector<8x128xf32>
    %c0_62 = arith.constant 0 : index
    %c0_63 = arith.constant 0 : index
    %111 = vector.load %arg17[%c0_62, %c0_63] : memref<1x128xf32, #tpu.memory_space<vmem>>, vector<1x128xf32>
    %112 = vector.broadcast %111 : vector<1x128xf32> to vector<8x128xf32>
    %113 = arith.addf %110, %112 : vector<8x128xf32>
    %cst_64 = arith.constant 0.000000e+00 : f32
    %114 = vector.broadcast %cst_64 : f32 to vector<8x128xf32>
    %115 = arith.maximumf %113, %114 : vector<8x128xf32>
    %116 = arith.truncf %115 : vector<8x128xf32> to vector<8x128xbf16>
    %c0_65 = arith.constant 0 : index
    %c0_66 = arith.constant 0 : index
    %117 = vector.load %arg18[%c0_65, %c0_66] : memref<128x32xbf16, #tpu.memory_space<vmem>>, vector<128x32xbf16>
    %cst_67 = arith.constant dense<0.000000e+00> : vector<8x32xf32>
    %118 = tpu.matmul %116, %117, %cst_67 {dimension_numbers = #tpu.dot_dimension_numbers<[1], [0], [0], [1], [0, 0, 1, 1], [], []>} : vector<8x128xbf16>, vector<128x32xbf16>, vector<8x32xf32> -> vector<8x32xf32>
    %c0_68 = arith.constant 0 : index
    %c0_69 = arith.constant 0 : index
    %119 = vector.load %arg19[%c0_68, %c0_69] : memref<1x32xf32, #tpu.memory_space<vmem>>, vector<1x32xf32>
    %120 = vector.broadcast %119 : vector<1x32xf32> to vector<8x32xf32>
    %121 = arith.addf %118, %120 : vector<8x32xf32>
    %122 = arith.addf %75, %121 : vector<8x32xf32>
    %c0_70 = arith.constant 0 : index
    %c0_71 = arith.constant 0 : index
    %c0_72 = arith.constant 0 : index
    %123 = vector.load %arg20[%c0_70, %c0_71, %c0_72] : memref<1x8x32xf32, #tpu.memory_space<vmem>>, vector<1x8x32xf32>
    %124 = vector.shape_cast %123 : vector<1x8x32xf32> to vector<8x32xf32>
    %125 = vector.shape_cast %122 : vector<8x32xf32> to vector<1x8x32xf32>
    tpu.vector_store %arg20[%c0_70, %c0_71, %c0_72], %125 {strides = array<i32>} : memref<1x8x32xf32, #tpu.memory_space<vmem>>, vector<1x8x32xf32>,
    return
  }
  func.func @transform_0(%arg0: i32) -> (i32, i32, i32) {
    %c0_i32 = arith.constant 0 : i32
    %c0_i32_0 = arith.constant 0 : i32
    %c0_i32_1 = arith.constant 0 : i32
    return %arg0, %c0_i32, %c0_i32_0 : i32, i32, i32
  }
  func.func @transform_1(%arg0: i32) -> (i32, i32) {
    %c0_i32 = arith.constant 0 : i32
    %c0_i32_0 = arith.constant 0 : i32
    %c0_i32_1 = arith.constant 0 : i32
    return %c0_i32, %c0_i32_0 : i32, i32
  }
  func.func @transform_2(%arg0: i32) -> (i32, i32) {
    %c0_i32 = arith.constant 0 : i32
    %c0_i32_0 = arith.constant 0 : i32
    %c0_i32_1 = arith.constant 0 : i32
    return %c0_i32, %c0_i32_0 : i32, i32
  }
  func.func @transform_3(%arg0: i32) -> (i32, i32, i32) {
    %c0_i32 = arith.constant 0 : i32
    %c0_i32_0 = arith.constant 0 : i32
    %c0_i32_1 = arith.constant 0 : i32
    %c0_i32_2 = arith.constant 0 : i32
    return %c0_i32, %c0_i32_0, %c0_i32_1 : i32, i32, i32
  }
  func.func @transform_4(%arg0: i32) -> (i32, i32, i32) {
    %c0_i32 = arith.constant 0 : i32
    %c0_i32_0 = arith.constant 0 : i32
    %c0_i32_1 = arith.constant 0 : i32
    %c0_i32_2 = arith.constant 0 : i32
    return %c0_i32, %c0_i32_0, %c0_i32_1 : i32, i32, i32
  }
  func.func @transform_5(%arg0: i32) -> (i32, i32, i32) {
    %c0_i32 = arith.constant 0 : i32
    %c0_i32_0 = arith.constant 0 : i32
    %c0_i32_1 = arith.constant 0 : i32
    %c0_i32_2 = arith.constant 0 : i32
    return %c0_i32, %c0_i32_0, %c0_i32_1 : i32, i32, i32
  }
  func.func @transform_6(%arg0: i32) -> (i32, i32, i32) {
    %c0_i32 = arith.constant 0 : i32
    %c0_i32_0 = arith.constant 0 : i32
    %c0_i32_1 = arith.constant 0 : i32
    %c0_i32_2 = arith.constant 0 : i32
    return %c0_i32, %c0_i32_0, %c0_i32_1 : i32, i32, i32
  }
  func.func @transform_7(%arg0: i32) -> (i32, i32, i32) {
    %c0_i32 = arith.constant 0 : i32
    %c0_i32_0 = arith.constant 0 : i32
    %c0_i32_1 = arith.constant 0 : i32
    %c0_i32_2 = arith.constant 0 : i32
    return %c0_i32, %c0_i32_0, %c0_i32_1 : i32, i32, i32
  }
  func.func @transform_8(%arg0: i32) -> (i32, i32, i32) {
    %c0_i32 = arith.constant 0 : i32
    %c0_i32_0 = arith.constant 0 : i32
    %c0_i32_1 = arith.constant 0 : i32
    %c0_i32_2 = arith.constant 0 : i32
    return %c0_i32, %c0_i32_0, %c0_i32_1 : i32, i32, i32
  }
  func.func @transform_9(%arg0: i32) -> (i32, i32, i32) {
    %c0_i32 = arith.constant 0 : i32
    %c0_i32_0 = arith.constant 0 : i32
    %c0_i32_1 = arith.constant 0 : i32
    %c0_i32_2 = arith.constant 0 : i32
    return %c0_i32, %c0_i32_0, %c0_i32_1 : i32, i32, i32
  }
  func.func @transform_10(%arg0: i32) -> (i32, i32) {
    %c0_i32 = arith.constant 0 : i32
    %c0_i32_0 = arith.constant 0 : i32
    %c0_i32_1 = arith.constant 0 : i32
    return %c0_i32, %c0_i32_0 : i32, i32
  }
  func.func @transform_11(%arg0: i32) -> (i32, i32) {
    %c0_i32 = arith.constant 0 : i32
    %c0_i32_0 = arith.constant 0 : i32
    %c0_i32_1 = arith.constant 0 : i32
    return %c0_i32, %c0_i32_0 : i32, i32
  }
  func.func @transform_12(%arg0: i32) -> (i32, i32) {
    %c0_i32 = arith.constant 0 : i32
    %c0_i32_0 = arith.constant 0 : i32
    %c0_i32_1 = arith.constant 0 : i32
    return %c0_i32, %c0_i32_0 : i32, i32
  }
  func.func @transform_13(%arg0: i32) -> (i32, i32) {
    %c0_i32 = arith.constant 0 : i32
    %c0_i32_0 = arith.constant 0 : i32
    %c0_i32_1 = arith.constant 0 : i32
    return %c0_i32, %c0_i32_0 : i32, i32
  }
  func.func @transform_14(%arg0: i32) -> (i32, i32) {
    %c0_i32 = arith.constant 0 : i32
    %c0_i32_0 = arith.constant 0 : i32
    %c0_i32_1 = arith.constant 0 : i32
    return %c0_i32, %c0_i32_0 : i32, i32
  }
  func.func @transform_15(%arg0: i32) -> (i32, i32) {
    %c0_i32 = arith.constant 0 : i32
    %c0_i32_0 = arith.constant 0 : i32
    %c0_i32_1 = arith.constant 0 : i32
    return %c0_i32, %c0_i32_0 : i32, i32
  }
  func.func @transform_16(%arg0: i32) -> (i32, i32) {
    %c0_i32 = arith.constant 0 : i32
    %c0_i32_0 = arith.constant 0 : i32
    %c0_i32_1 = arith.constant 0 : i32
    return %c0_i32, %c0_i32_0 : i32, i32
  }
  func.func @transform_17(%arg0: i32) -> (i32, i32) {
    %c0_i32 = arith.constant 0 : i32
    %c0_i32_0 = arith.constant 0 : i32
    %c0_i32_1 = arith.constant 0 : i32
    return %c0_i32, %c0_i32_0 : i32, i32
  }
  func.func @transform_18(%arg0: i32) -> (i32, i32) {
    %c0_i32 = arith.constant 0 : i32
    %c0_i32_0 = arith.constant 0 : i32
    %c0_i32_1 = arith.constant 0 : i32
    return %c0_i32, %c0_i32_0 : i32, i32
  }
  func.func @transform_19(%arg0: i32) -> (i32, i32, i32) {
    %c0_i32 = arith.constant 0 : i32
    %c0_i32_0 = arith.constant 0 : i32
    %c0_i32_1 = arith.constant 0 : i32
    return %arg0, %c0_i32, %c0_i32_0 : i32, i32, i32
  }
}

module attributes {stable_mosaic.version = 11 : i64} {
  func.func @transformer_block_kernel(%arg0: i32, %arg1: memref<1x8x32xf32, #tpu.memory_space<vmem>>, %arg2: memref<1x32xf32, #tpu.memory_space<vmem>>, %arg3: memref<1x32xf32, #tpu.memory_space<vmem>>, %arg4: memref<4x32x8xbf16, #tpu.memory_space<vmem>>, %arg5: memref<4x1x8xf32, #tpu.memory_space<vmem>>, %arg6: memref<4x32x8xbf16, #tpu.memory_space<vmem>>, %arg7: memref<4x1x8xf32, #tpu.memory_space<vmem>>, %arg8: memref<4x32x8xbf16, #tpu.memory_space<vmem>>, %arg9: memref<4x1x8xf32, #tpu.memory_space<vmem>>, %arg10: memref<4x8x32xbf16, #tpu.memory_space<vmem>>, %arg11: memref<1x32xf32, #tpu.memory_space<vmem>>, %arg12: memref<1x32xf32, #tpu.memory_space<vmem>>, %arg13: memref<1x32xf32, #tpu.memory_space<vmem>>, %arg14: memref<32x128xbf16, #tpu.memory_space<vmem>>, %arg15: memref<1x128xf32, #tpu.memory_space<vmem>>, %arg16: memref<128x128xbf16, #tpu.memory_space<vmem>>, %arg17: memref<1x128xf32, #tpu.memory_space<vmem>>, %arg18: memref<128x32xbf16, #tpu.memory_space<vmem>>, %arg19: memref<1x32xf32, #tpu.memory_space<vmem>>, %arg20: memref<1x8x32xf32, #tpu.memory_space<vmem>>) attributes {dimension_semantics = [#tpu.dimension_semantics<parallel>], iteration_bounds = array<i64: 2>, scalar_prefetch = 0 : i64, scratch_operands = 0 : i64, tpu.core_type = #tpu.core_type<tc>, window_params = [{transform_indices = @transform_0, window_bounds = array<i64: 1, 8, 32>}, {pipeline_mode = #tpu.pipeline_mode<synchronous>, transform_indices = @transform_1, window_bounds = array<i64: 1, 32>}, {pipeline_mode = #tpu.pipeline_mode<synchronous>, transform_indices = @transform_2, window_bounds = array<i64: 1, 32>}, {pipeline_mode = #tpu.pipeline_mode<synchronous>, transform_indices = @transform_3, window_bounds = array<i64: 4, 32, 8>}, {pipeline_mode = #tpu.pipeline_mode<synchronous>, transform_indices = @transform_4, window_bounds = array<i64: 4, 1, 8>}, {pipeline_mode = #tpu.pipeline_mode<synchronous>, transform_indices = @transform_5, window_bounds = array<i64: 4, 32, 8>}, {pipeline_mode = #tpu.pipeline_mode<synchronous>, transform_indices = @transform_6, window_bounds = array<i64: 4, 1, 8>}, {pipeline_mode = #tpu.pipeline_mode<synchronous>, transform_indices = @transform_7, window_bounds = array<i64: 4, 32, 8>}, {pipeline_mode = #tpu.pipeline_mode<synchronous>, transform_indices = @transform_8, window_bounds = array<i64: 4, 1, 8>}, {pipeline_mode = #tpu.pipeline_mode<synchronous>, transform_indices = @transform_9, window_bounds = array<i64: 4, 8, 32>}, {pipeline_mode = #tpu.pipeline_mode<synchronous>, transform_indices = @transform_10, window_bounds = array<i64: 1, 32>}, {pipeline_mode = #tpu.pipeline_mode<synchronous>, transform_indices = @transform_11, window_bounds = array<i64: 1, 32>}, {pipeline_mode = #tpu.pipeline_mode<synchronous>, transform_indices = @transform_12, window_bounds = array<i64: 1, 32>}, {pipeline_mode = #tpu.pipeline_mode<synchronous>, transform_indices = @transform_13, window_bounds = array<i64: 32, 128>}, {pipeline_mode = #tpu.pipeline_mode<synchronous>, transform_indices = @transform_14, window_bounds = array<i64: 1, 128>}, {pipeline_mode = #tpu.pipeline_mode<synchronous>, transform_indices = @transform_15, window_bounds = array<i64: 128, 128>}, {pipeline_mode = #tpu.pipeline_mode<synchronous>, transform_indices = @transform_16, window_bounds = array<i64: 1, 128>}, {pipeline_mode = #tpu.pipeline_mode<synchronous>, transform_indices = @transform_17, window_bounds = array<i64: 128, 32>}, {pipeline_mode = #tpu.pipeline_mode<synchronous>, transform_indices = @transform_18, window_bounds = array<i64: 1, 32>}, {transform_indices = @transform_19, window_bounds = array<i64: 1, 8, 32>}]} {
    %c0 = arith.constant 0 : index
    %c0_0 = arith.constant 0 : index
    %c0_1 = arith.constant 0 : index
    %0 = vector.load %arg1[%c0, %c0_0, %c0_1] : memref<1x8x32xf32, #tpu.memory_space<vmem>>, vector<1x8x32xf32>
    %1 = vector.shape_cast %0 : vector<1x8x32xf32> to vector<8x32xf32>
    %c0_2 = arith.constant 0 : index
    %c0_3 = arith.constant 0 : index
    %2 = vector.load %arg2[%c0_2, %c0_3] : memref<1x32xf32, #tpu.memory_space<vmem>>, vector<1x32xf32>
    %c0_4 = arith.constant 0 : index
    %c0_5 = arith.constant 0 : index
    %3 = vector.load %arg3[%c0_4, %c0_5] : memref<1x32xf32, #tpu.memory_space<vmem>>, vector<1x32xf32>
    %cst = arith.constant dense<0.000000e+00> : vector<8xf32>
    %4 = vector.multi_reduction <add>, %1, %cst [1] : vector<8x32xf32> to vector<8xf32>
    %5 = vector.shape_cast %4 : vector<8xf32> to vector<8x1xf32>
    %cst_6 = arith.constant 3.200000e+01 : f32
    %6 = vector.broadcast %cst_6 : f32 to vector<8x1xf32>
    %7 = arith.divf %5, %6 : vector<8x1xf32>
    %8 = vector.broadcast %7 : vector<8x1xf32> to vector<8x32xf32>
    %9 = arith.subf %1, %8 : vector<8x32xf32>
    %10 = arith.mulf %9, %9 : vector<8x32xf32>
    %cst_7 = arith.constant dense<0.000000e+00> : vector<8xf32>
    %11 = vector.multi_reduction <add>, %10, %cst_7 [1] : vector<8x32xf32> to vector<8xf32>
    %12 = vector.shape_cast %11 : vector<8xf32> to vector<8x1xf32>
    %cst_8 = arith.constant 3.200000e+01 : f32
    %13 = vector.broadcast %cst_8 : f32 to vector<8x1xf32>
    %14 = arith.divf %12, %13 : vector<8x1xf32>
    %15 = vector.broadcast %7 : vector<8x1xf32> to vector<8x32xf32>
    %16 = arith.subf %1, %15 : vector<8x32xf32>
    %cst_9 = arith.constant 9.99999974E-6 : f32
    %17 = vector.broadcast %cst_9 : f32 to vector<8x1xf32>
    %18 = arith.addf %14, %17 : vector<8x1xf32>
    %19 = math.rsqrt %18 : vector<8x1xf32>
    %20 = vector.broadcast %19 : vector<8x1xf32> to vector<8x32xf32>
    %21 = arith.mulf %16, %20 : vector<8x32xf32>
    %22 = vector.broadcast %2 : vector<1x32xf32> to vector<8x32xf32>
    %23 = arith.mulf %21, %22 : vector<8x32xf32>
    %24 = vector.broadcast %3 : vector<1x32xf32> to vector<8x32xf32>
    %25 = arith.addf %23, %24 : vector<8x32xf32>
    %26 = arith.truncf %25 : vector<8x32xf32> to vector<8x32xbf16>
    %27 = vector.shape_cast %26 : vector<8x32xbf16> to vector<1x8x32xbf16>
    %28 = vector.shape_cast %27 : vector<1x8x32xbf16> to vector<1x8x32xbf16>
    %29 = vector.broadcast %28 : vector<1x8x32xbf16> to vector<4x8x32xbf16>
    %c0_10 = arith.constant 0 : index
    %c0_11 = arith.constant 0 : index
    %c0_12 = arith.constant 0 : index
    %30 = vector.load %arg4[%c0_10, %c0_11, %c0_12] : memref<4x32x8xbf16, #tpu.memory_space<vmem>>, vector<4x32x8xbf16>
    "tpu.trace_start"() <{level = 10 : i32, message = "hte,hed->htd"}> : () -> ()
    %cst_13 = arith.constant dense<0.000000e+00> : vector<4x8x8xf32>
    %31 = tpu.matmul %29, %30, %cst_13 {dimension_numbers = #tpu.dot_dimension_numbers<[2], [1], [1], [2], [0, 0, 0, 1, 1, 2], [0], [0]>} : vector<4x8x32xbf16>, vector<4x32x8xbf16>, vector<4x8x8xf32> -> vector<4x8x8xf32>
    "tpu.trace_stop"() : () -> ()
    %c0_14 = arith.constant 0 : index
    %c0_15 = arith.constant 0 : index
    %c0_16 = arith.constant 0 : index
    %32 = vector.load %arg5[%c0_14, %c0_15, %c0_16] : memref<4x1x8xf32, #tpu.memory_space<vmem>>, vector<4x1x8xf32>
    %33 = vector.broadcast %32 : vector<4x1x8xf32> to vector<4x8x8xf32>
    %34 = arith.addf %31, %33 : vector<4x8x8xf32>
    %c0_17 = arith.constant 0 : index
    %c0_18 = arith.constant 0 : index
    %c0_19 = arith.constant 0 : index
    %35 = vector.load %arg6[%c0_17, %c0_18, %c0_19] : memref<4x32x8xbf16, #tpu.memory_space<vmem>>, vector<4x32x8xbf16>
    "tpu.trace_start"() <{level = 10 : i32, message = "hte,hed->htd"}> : () -> ()
    %cst_20 = arith.constant dense<0.000000e+00> : vector<4x8x8xf32>
    %36 = tpu.matmul %29, %35, %cst_20 {dimension_numbers = #tpu.dot_dimension_numbers<[2], [1], [1], [2], [0, 0, 0, 1, 1, 2], [0], [0]>} : vector<4x8x32xbf16>, vector<4x32x8xbf16>, vector<4x8x8xf32> -> vector<4x8x8xf32>
    "tpu.trace_stop"() : () -> ()
    %c0_21 = arith.constant 0 : index
    %c0_22 = arith.constant 0 : index
    %c0_23 = arith.constant 0 : index
    %37 = vector.load %arg7[%c0_21, %c0_22, %c0_23] : memref<4x1x8xf32, #tpu.memory_space<vmem>>, vector<4x1x8xf32>
    %38 = vector.broadcast %37 : vector<4x1x8xf32> to vector<4x8x8xf32>
    %39 = arith.addf %36, %38 : vector<4x8x8xf32>
    %c0_24 = arith.constant 0 : index
    %c0_25 = arith.constant 0 : index
    %c0_26 = arith.constant 0 : index
    %40 = vector.load %arg8[%c0_24, %c0_25, %c0_26] : memref<4x32x8xbf16, #tpu.memory_space<vmem>>, vector<4x32x8xbf16>
    "tpu.trace_start"() <{level = 10 : i32, message = "hte,hed->htd"}> : () -> ()
    %cst_27 = arith.constant dense<0.000000e+00> : vector<4x8x8xf32>
    %41 = tpu.matmul %29, %40, %cst_27 {dimension_numbers = #tpu.dot_dimension_numbers<[2], [1], [1], [2], [0, 0, 0, 1, 1, 2], [0], [0]>} : vector<4x8x32xbf16>, vector<4x32x8xbf16>, vector<4x8x8xf32> -> vector<4x8x8xf32>
    "tpu.trace_stop"() : () -> ()
    %c0_28 = arith.constant 0 : index
    %c0_29 = arith.constant 0 : index
    %c0_30 = arith.constant 0 : index
    %42 = vector.load %arg9[%c0_28, %c0_29, %c0_30] : memref<4x1x8xf32, #tpu.memory_space<vmem>>, vector<4x1x8xf32>
    %43 = vector.broadcast %42 : vector<4x1x8xf32> to vector<4x8x8xf32>
    %44 = arith.addf %41, %43 : vector<4x8x8xf32>
    %cst_31 = arith.constant 0.353553385 : f32
    %45 = vector.broadcast %cst_31 : f32 to vector<4x8x8xf32>
    %46 = arith.mulf %34, %45 : vector<4x8x8xf32>
    %47 = arith.truncf %46 : vector<4x8x8xf32> to vector<4x8x8xbf16>
    %48 = arith.truncf %39 : vector<4x8x8xf32> to vector<4x8x8xbf16>
    "tpu.trace_start"() <{level = 10 : i32, message = "hqd,hkd->hqk"}> : () -> ()
    %cst_32 = arith.constant dense<0.000000e+00> : vector<4x8x8xf32>
    %49 = tpu.matmul %47, %48, %cst_32 {dimension_numbers = #tpu.dot_dimension_numbers<[2], [2], [1], [1], [0, 0, 0, 1, 1, 1], [0], [0]>} : vector<4x8x8xbf16>, vector<4x8x8xbf16>, vector<4x8x8xf32> -> vector<4x8x8xf32>
    "tpu.trace_stop"() : () -> ()
    %50 = tpu.iota {dimensions = array<i32: 1>} : vector<4x8x8xi32>
    %51 = tpu.iota {dimensions = array<i32: 2>} : vector<4x8x8xi32>
    %52 = arith.cmpi sle, %51, %50 : vector<4x8x8xi32>
    %cst_33 = arith.constant -1.000000e+30 : f32
    %53 = vector.broadcast %cst_33 : f32 to vector<4x8x8xf32>
    %54 = arith.select %52, %49, %53 : vector<4x8x8xi1>, vector<4x8x8xf32>
    %cst_34 = arith.constant dense<0xFF800000> : vector<4x8xf32>
    %55 = vector.multi_reduction <maximumf>, %54, %cst_34 [2] : vector<4x8x8xf32> to vector<4x8xf32>
    %56 = vector.shape_cast %55 : vector<4x8xf32> to vector<4x8x1xf32>
    %57 = vector.broadcast %56 : vector<4x8x1xf32> to vector<4x8x8xf32>
    %58 = arith.subf %54, %57 : vector<4x8x8xf32>
    %59 = math.exp %58 : vector<4x8x8xf32>
    %cst_35 = arith.constant dense<0.000000e+00> : vector<4x8xf32>
    %60 = vector.multi_reduction <add>, %59, %cst_35 [2] : vector<4x8x8xf32> to vector<4x8xf32>
    %61 = vector.shape_cast %60 : vector<4x8xf32> to vector<4x8x1xf32>
    %62 = tpu.reciprocal %61 {approx = true} : vector<4x8x1xf32> -> vector<4x8x1xf32>
    %63 = vector.broadcast %62 : vector<4x8x1xf32> to vector<4x8x8xf32>
    %64 = arith.mulf %59, %63 : vector<4x8x8xf32>
    %65 = arith.truncf %64 : vector<4x8x8xf32> to vector<4x8x8xbf16>
    %66 = arith.truncf %44 : vector<4x8x8xf32> to vector<4x8x8xbf16>
    "tpu.trace_start"() <{level = 10 : i32, message = "hqk,hkd->hqd"}> : () -> ()
    %cst_36 = arith.constant dense<0.000000e+00> : vector<4x8x8xf32>
    %67 = tpu.matmul %65, %66, %cst_36 {dimension_numbers = #tpu.dot_dimension_numbers<[2], [1], [1], [2], [0, 0, 0, 1, 1, 2], [0], [0]>} : vector<4x8x8xbf16>, vector<4x8x8xbf16>, vector<4x8x8xf32> -> vector<4x8x8xf32>
    "tpu.trace_stop"() : () -> ()
    %68 = arith.truncf %67 : vector<4x8x8xf32> to vector<4x8x8xbf16>
    %c0_37 = arith.constant 0 : index
    %c0_38 = arith.constant 0 : index
    %c0_39 = arith.constant 0 : index
    %69 = vector.load %arg10[%c0_37, %c0_38, %c0_39] : memref<4x8x32xbf16, #tpu.memory_space<vmem>>, vector<4x8x32xbf16>
    "tpu.trace_start"() <{level = 10 : i32, message = "htd,hde->hte"}> : () -> ()
    %cst_40 = arith.constant dense<0.000000e+00> : vector<4x8x32xf32>
    %70 = tpu.matmul %68, %69, %cst_40 {dimension_numbers = #tpu.dot_dimension_numbers<[2], [1], [1], [2], [0, 0, 0, 1, 1, 2], [0], [0]>} : vector<4x8x8xbf16>, vector<4x8x32xbf16>, vector<4x8x32xf32> -> vector<4x8x32xf32>
    "tpu.trace_stop"() : () -> ()
    %cst_41 = arith.constant dense<0.000000e+00> : vector<8x32xf32>
    %71 = vector.multi_reduction <add>, %70, %cst_41 [0] : vector<4x8x32xf32> to vector<8x32xf32>
    %c0_42 = arith.constant 0 : index
    %c0_43 = arith.constant 0 : index
    %72 = vector.load %arg11[%c0_42, %c0_43] : memref<1x32xf32, #tpu.memory_space<vmem>>, vector<1x32xf32>
    %73 = vector.broadcast %72 : vector<1x32xf32> to vector<8x32xf32>
    %74 = arith.addf %71, %73 : vector<8x32xf32>
    %75 = arith.addf %1, %74 : vector<8x32xf32>
    %c0_44 = arith.constant 0 : index
    %c0_45 = arith.constant 0 : index
    %76 = vector.load %arg12[%c0_44, %c0_45] : memref<1x32xf32, #tpu.memory_space<vmem>>, vector<1x32xf32>
    %c0_46 = arith.constant 0 : index
    %c0_47 = arith.constant 0 : index
    %77 = vector.load %arg13[%c0_46, %c0_47] : memref<1x32xf32, #tpu.memory_space<vmem>>, vector<1x32xf32>
    %cst_48 = arith.constant dense<0.000000e+00> : vector<8xf32>
    %78 = vector.multi_reduction <add>, %75, %cst_48 [1] : vector<8x32xf32> to vector<8xf32>
    %79 = vector.shape_cast %78 : vector<8xf32> to vector<8x1xf32>
    %cst_49 = arith.constant 3.200000e+01 : f32
    %80 = vector.broadcast %cst_49 : f32 to vector<8x1xf32>
    %81 = arith.divf %79, %80 : vector<8x1xf32>
    %82 = vector.broadcast %81 : vector<8x1xf32> to vector<8x32xf32>
    %83 = arith.subf %75, %82 : vector<8x32xf32>
    %84 = arith.mulf %83, %83 : vector<8x32xf32>
    %cst_50 = arith.constant dense<0.000000e+00> : vector<8xf32>
    %85 = vector.multi_reduction <add>, %84, %cst_50 [1] : vector<8x32xf32> to vector<8xf32>
    %86 = vector.shape_cast %85 : vector<8xf32> to vector<8x1xf32>
    %cst_51 = arith.constant 3.200000e+01 : f32
    %87 = vector.broadcast %cst_51 : f32 to vector<8x1xf32>
    %88 = arith.divf %86, %87 : vector<8x1xf32>
    %89 = vector.broadcast %81 : vector<8x1xf32> to vector<8x32xf32>
    %90 = arith.subf %75, %89 : vector<8x32xf32>
    %cst_52 = arith.constant 9.99999974E-6 : f32
    %91 = vector.broadcast %cst_52 : f32 to vector<8x1xf32>
    %92 = arith.addf %88, %91 : vector<8x1xf32>
    %93 = math.rsqrt %92 : vector<8x1xf32>
    %94 = vector.broadcast %93 : vector<8x1xf32> to vector<8x32xf32>
    %95 = arith.mulf %90, %94 : vector<8x32xf32>
    %96 = vector.broadcast %76 : vector<1x32xf32> to vector<8x32xf32>
    %97 = arith.mulf %95, %96 : vector<8x32xf32>
    %98 = vector.broadcast %77 : vector<1x32xf32> to vector<8x32xf32>
    %99 = arith.addf %97, %98 : vector<8x32xf32>
    %100 = arith.truncf %99 : vector<8x32xf32> to vector<8x32xbf16>
    %c0_53 = arith.constant 0 : index
    %c0_54 = arith.constant 0 : index
    %101 = vector.load %arg14[%c0_53, %c0_54] : memref<32x128xbf16, #tpu.memory_space<vmem>>, vector<32x128xbf16>
    %cst_55 = arith.constant dense<0.000000e+00> : vector<8x128xf32>
    %102 = tpu.matmul %100, %101, %cst_55 {dimension_numbers = #tpu.dot_dimension_numbers<[1], [0], [0], [1], [0, 0, 1, 1], [], []>} : vector<8x32xbf16>, vector<32x128xbf16>, vector<8x128xf32> -> vector<8x128xf32>
    %c0_56 = arith.constant 0 : index
    %c0_57 = arith.constant 0 : index
    %103 = vector.load %arg15[%c0_56, %c0_57] : memref<1x128xf32, #tpu.memory_space<vmem>>, vector<1x128xf32>
    %104 = vector.broadcast %103 : vector<1x128xf32> to vector<8x128xf32>
    %105 = arith.addf %102, %104 : vector<8x128xf32>
    %cst_58 = arith.constant 0.000000e+00 : f32
    %106 = vector.broadcast %cst_58 : f32 to vector<8x128xf32>
    %107 = arith.maximumf %105, %106 : vector<8x128xf32>
    %108 = arith.truncf %107 : vector<8x128xf32> to vector<8x128xbf16>
    %c0_59 = arith.constant 0 : index
    %c0_60 = arith.constant 0 : index
    %109 = vector.load %arg16[%c0_59, %c0_60] : memref<128x128xbf16, #tpu.memory_space<vmem>>, vector<128x128xbf16>
    %cst_61 = arith.constant dense<0.000000e+00> : vector<8x128xf32>
    %110 = tpu.matmul %108, %109, %cst_61 {dimension_numbers = #tpu.dot_dimension_numbers<[1], [0], [0], [1], [0, 0, 1, 1], [], []>} : vector<8x128xbf16>, vector<128x128xbf16>, vector<8x128xf32> -> vector<8x128xf32>
    %c0_62 = arith.constant 0 : index
    %c0_63 = arith.constant 0 : index
    %111 = vector.load %arg17[%c0_62, %c0_63] : memref<1x128xf32, #tpu.memory_space<vmem>>, vector<1x128xf32>
    %112 = vector.broadcast %111 : vector<1x128xf32> to vector<8x128xf32>
    %113 = arith.addf %110, %112 : vector<8x128xf32>
    %cst_64 = arith.constant 0.000000e+00 : f32
    %114 = vector.broadcast %cst_64 : f32 to vector<8x128xf32>
    %115 = arith.maximumf %113, %114 : vector<8x128xf32>
    %116 = arith.truncf %115 : vector<8x128xf32> to vector<8x128xbf16>
    %c0_65 = arith.constant 0 : index
    %c0_66 = arith.constant 0 : index
    %117 = vector.load %arg18[%c0_65, %c0_66] : memref<128x32xbf16, #tpu.memory_space<vmem>>, vector<128x32xbf16>
    %cst_67 = arith.constant dense<0.000000e+00> : vector<8x32xf32>
    %118 = tpu.matmul %116, %117, %cst_67 {dimension_numbers = #tpu.dot_dimension_numbers<[1], [0], [0], [1], [0, 0, 1, 1], [], []>} : vector<8x128xbf16>, vector<128x32xbf16>, vector<8x32xf32> -> vector<8x32xf32>
    %c0_68 = arith.constant 0 : index
    %c0_69 = arith.constant 0 : index
    %119 = vector.load %arg19[%c0_68, %c0_69] : memref<1x32xf32, #tpu.memory_space<vmem>>, vector<1x32xf32>
    %120 = vector.broadcast %119 : vector<1x32xf32> to vector<8x32xf32>
    %121 = arith.addf %118, %120 : vector<8x32xf32>
    %122 = arith.addf %75, %121 : vector<8x32xf32>
    %c0_70 = arith.constant 0 : index
    %c0_71 = arith.constant 0 : index
    %c0_72 = arith.constant 0 : index
    %123 = vector.load %arg20[%c0_70, %c0_71, %c0_72] : memref<1x8x32xf32, #tpu.memory_space<vmem>>, vector<1x8x32xf32>
    %124 = vector.shape_cast %123 : vector<1x8x32xf32> to vector<8x32xf32>
    %125 = vector.shape_cast %122 : vector<8x32xf32> to vector<1x8x32xf32>
    tpu.vector_store %arg20[%c0_70, %c0_71, %c0_72], %125 {strides = array<i32>} : memref<1x8x32xf32, #tpu.memory_space<vmem>>, vector<1x8x32xf32>,
    return
  }
  func.func @transform_0(%arg0: i32) -> (i32, i32, i32) {
    %c0_i32 = arith.constant 0 : i32
    %c0_i32_0 = arith.constant 0 : i32
    %c0_i32_1 = arith.constant 0 : i32
    return %arg0, %c0_i32, %c0_i32_0 : i32, i32, i32
  }
  func.func @transform_1(%arg0: i32) -> (i32, i32) {
    %c0_i32 = arith.constant 0 : i32
    %c0_i32_0 = arith.constant 0 : i32
    %c0_i32_1 = arith.constant 0 : i32
    return %c0_i32, %c0_i32_0 : i32, i32
  }
  func.func @transform_2(%arg0: i32) -> (i32, i32) {
    %c0_i32 = arith.constant 0 : i32
    %c0_i32_0 = arith.constant 0 : i32
    %c0_i32_1 = arith.constant 0 : i32
    return %c0_i32, %c0_i32_0 : i32, i32
  }
  func.func @transform_3(%arg0: i32) -> (i32, i32, i32) {
    %c0_i32 = arith.constant 0 : i32
    %c0_i32_0 = arith.constant 0 : i32
    %c0_i32_1 = arith.constant 0 : i32
    %c0_i32_2 = arith.constant 0 : i32
    return %c0_i32, %c0_i32_0, %c0_i32_1 : i32, i32, i32
  }
  func.func @transform_4(%arg0: i32) -> (i32, i32, i32) {
    %c0_i32 = arith.constant 0 : i32
    %c0_i32_0 = arith.constant 0 : i32
    %c0_i32_1 = arith.constant 0 : i32
    %c0_i32_2 = arith.constant 0 : i32
    return %c0_i32, %c0_i32_0, %c0_i32_1 : i32, i32, i32
  }
  func.func @transform_5(%arg0: i32) -> (i32, i32, i32) {
    %c0_i32 = arith.constant 0 : i32
    %c0_i32_0 = arith.constant 0 : i32
    %c0_i32_1 = arith.constant 0 : i32
    %c0_i32_2 = arith.constant 0 : i32
    return %c0_i32, %c0_i32_0, %c0_i32_1 : i32, i32, i32
  }
  func.func @transform_6(%arg0: i32) -> (i32, i32, i32) {
    %c0_i32 = arith.constant 0 : i32
    %c0_i32_0 = arith.constant 0 : i32
    %c0_i32_1 = arith.constant 0 : i32
    %c0_i32_2 = arith.constant 0 : i32
    return %c0_i32, %c0_i32_0, %c0_i32_1 : i32, i32, i32
  }
  func.func @transform_7(%arg0: i32) -> (i32, i32, i32) {
    %c0_i32 = arith.constant 0 : i32
    %c0_i32_0 = arith.constant 0 : i32
    %c0_i32_1 = arith.constant 0 : i32
    %c0_i32_2 = arith.constant 0 : i32
    return %c0_i32, %c0_i32_0, %c0_i32_1 : i32, i32, i32
  }
  func.func @transform_8(%arg0: i32) -> (i32, i32, i32) {
    %c0_i32 = arith.constant 0 : i32
    %c0_i32_0 = arith.constant 0 : i32
    %c0_i32_1 = arith.constant 0 : i32
    %c0_i32_2 = arith.constant 0 : i32
    return %c0_i32, %c0_i32_0, %c0_i32_1 : i32, i32, i32
  }
  func.func @transform_9(%arg0: i32) -> (i32, i32, i32) {
    %c0_i32 = arith.constant 0 : i32
    %c0_i32_0 = arith.constant 0 : i32
    %c0_i32_1 = arith.constant 0 : i32
    %c0_i32_2 = arith.constant 0 : i32
    return %c0_i32, %c0_i32_0, %c0_i32_1 : i32, i32, i32
  }
  func.func @transform_10(%arg0: i32) -> (i32, i32) {
    %c0_i32 = arith.constant 0 : i32
    %c0_i32_0 = arith.constant 0 : i32
    %c0_i32_1 = arith.constant 0 : i32
    return %c0_i32, %c0_i32_0 : i32, i32
  }
  func.func @transform_11(%arg0: i32) -> (i32, i32) {
    %c0_i32 = arith.constant 0 : i32
    %c0_i32_0 = arith.constant 0 : i32
    %c0_i32_1 = arith.constant 0 : i32
    return %c0_i32, %c0_i32_0 : i32, i32
  }
  func.func @transform_12(%arg0: i32) -> (i32, i32) {
    %c0_i32 = arith.constant 0 : i32
    %c0_i32_0 = arith.constant 0 : i32
    %c0_i32_1 = arith.constant 0 : i32
    return %c0_i32, %c0_i32_0 : i32, i32
  }
  func.func @transform_13(%arg0: i32) -> (i32, i32) {
    %c0_i32 = arith.constant 0 : i32
    %c0_i32_0 = arith.constant 0 : i32
    %c0_i32_1 = arith.constant 0 : i32
    return %c0_i32, %c0_i32_0 : i32, i32
  }
  func.func @transform_14(%arg0: i32) -> (i32, i32) {
    %c0_i32 = arith.constant 0 : i32
    %c0_i32_0 = arith.constant 0 : i32
    %c0_i32_1 = arith.constant 0 : i32
    return %c0_i32, %c0_i32_0 : i32, i32
  }
  func.func @transform_15(%arg0: i32) -> (i32, i32) {
    %c0_i32 = arith.constant 0 : i32
    %c0_i32_0 = arith.constant 0 : i32
    %c0_i32_1 = arith.constant 0 : i32
    return %c0_i32, %c0_i32_0 : i32, i32
  }
  func.func @transform_16(%arg0: i32) -> (i32, i32) {
    %c0_i32 = arith.constant 0 : i32
    %c0_i32_0 = arith.constant 0 : i32
    %c0_i32_1 = arith.constant 0 : i32
    return %c0_i32, %c0_i32_0 : i32, i32
  }
  func.func @transform_17(%arg0: i32) -> (i32, i32) {
    %c0_i32 = arith.constant 0 : i32
    %c0_i32_0 = arith.constant 0 : i32
    %c0_i32_1 = arith.constant 0 : i32
    return %c0_i32, %c0_i32_0 : i32, i32
  }
  func.func @transform_18(%arg0: i32) -> (i32, i32) {
    %c0_i32 = arith.constant 0 : i32
    %c0_i32_0 = arith.constant 0 : i32
    %c0_i32_1 = arith.constant 0 : i32
    return %c0_i32, %c0_i32_0 : i32, i32
  }
  func.func @transform_19(%arg0: i32) -> (i32, i32, i32) {
    %c0_i32 = arith.constant 0 : i32
    %c0_i32_0 = arith.constant 0 : i32
    %c0_i32_1 = arith.constant 0 : i32
    return %arg0, %c0_i32, %c0_i32_0 : i32, i32, i32
  }
}

</mosaic_0001>

<bundles_post_ra>
// kernel: tpu_custom_call.1
= control target key start
LH: loop header
LB: loop body
LE: loop exit
PB: predicated region body
PF: predicated region fallthrough
CT: control target
= control target key end

     0   :  { %s3594_s0 = inlined_call_operand.vmem [shape: f32[2,8,32], index: 0, kind: input, shape index: {}]   ;;  %s3595_s1 = inlined_call_operand.vmem [shape: f32[1,32], index: 1, kind: input, shape index: {}]   ;;  %s3596_s2 = inlined_call_operand.vmem [shape: f32[1,32], index: 2, kind: input, shape index: {}]   ;;  %s3597_s3 = inlined_call_operand.vmem [shape: bf16[4,32,8], index: 3, kind: input, shape index: {}]   ;;  %s3598_s4 = inlined_call_operand.vmem [shape: f32[4,1,8], index: 4, kind: input, shape index: {}]   ;;  %s3599_s5 = inlined_call_operand.vmem [shape: bf16[4,32,8], index: 5, kind: input, shape index: {}]   ;;  %s3600_s6 = inlined_call_operand.vmem [shape: f32[4,1,8], index: 6, kind: input, shape index: {}]   ;;  %s3601_s7 = inlined_call_operand.vmem [shape: bf16[4,32,8], index: 7, kind: input, shape index: {}]   ;;  %s3602_s8 = inlined_call_operand.vmem [shape: f32[4,1,8], index: 8, kind: input, shape index: {}]   ;;  %s3603_s9 = inlined_call_operand.vmem [shape: bf16[4,8,32], index: 9, kind: input, shape index: {}]   ;;  %s3604_s10 = inlined_call_operand.vmem [shape: f32[1,32], index: 10, kind: input, shape index: {}]   ;;  %s3605_s11 = inlined_call_operand.vmem [shape: f32[1,32], index: 11, kind: input, shape index: {}]   ;;  %s3606_s12 = inlined_call_operand.vmem [shape: f32[1,32], index: 12, kind: input, shape index: {}]   ;;  %s3607_s13 = inlined_call_operand.vmem [shape: bf16[32,128], index: 13, kind: input, shape index: {}]   ;;  %s3608_s14 = inlined_call_operand.vmem [shape: f32[1,128], index: 14, kind: input, shape index: {}]   ;;  %s3609_s15 = inlined_call_operand.vmem [shape: bf16[128,128], index: 15, kind: input, shape index: {}]   ;;  %s3610_s16 = inlined_call_operand.vmem [shape: f32[1,128], index: 16, kind: input, shape index: {}]   ;;  %s3611_s17 = inlined_call_operand.vmem [shape: bf16[128,32], index: 17, kind: input, shape index: {}]   ;;  %s3612_s18 = inlined_call_operand.vmem [shape: f32[1,32], index: 18, kind: input, shape index: {}]   ;;  %s3613_s19 = inlined_call_operand.hbm [shape: f32[2,8,32], index: 19, kind: output, shape index: {}]  }
   0x1   :  { %3621 = sst [smem:[#allocation10_spill]] %s3594_s0 }
   0x2   :  { %3622 = sst [smem:[#allocation11_spill]] %s3595_s1 }
   0x3   :  { %3623 = sst [smem:[#allocation12_spill]] %s3596_s2 }
   0x4   :  { %3624 = sst [smem:[#allocation13_spill]] %s3597_s3 }
   0x5   :  { %24 = vsyncpa [#allocation3], 0 }
   0x6   :  { %26 = vsyncpa [#allocation3 + $0x1], 0  ;;  %s3101_s0 = smov 0   ;;  %s3103_s30 = smov 0  }
   0x7   :  { %s3105_s20 = smov 0   ;;  %s3107_s21 = smov 0  }
   0x8 LB: > { %3625 = sst [smem:[#allocation5_spill]] %s2984_s0  ;;  %s3122_s1 = sadd.s32 4294967295, %s2996_s21   ;;  %s2996_s21 = sphi %s3107_s21, %s3639_s21   ;;  %s2992_s20 = sphi %s3105_s20, %s3641_s20   ;;  %s2988_s30 = sphi %s3103_s30, %s3643_s30   ;;  %s2984_s0 = sphi %s3101_s0, %s3642_s0  }
   0x9   : > { %3626 = sst [smem:[#allocation6_spill]] %s2992_s20  ;;  %s2439_s22 = sadd.s32 4294967294, %s2996_s21  }
   0xa   : > { %s3126_s2 = sadd.s32 1, %s2996_s21   ;;  %s443_s23 = sadd.s32 1, %s2992_s20 }
   0xb   : > { %3627 = sst [smem:[#allocation7_spill]] %s3126_s2  ;;  %s440_s24 = ssub.s32 %s2996_s21, %s3126_s2 }
   0xc   : > { %p453_p0 = scmp.ne.s32.totalorder %s2992_s20, %s2988_s30  ;;  %p441_p1 = scmp.eq.s32.totalorder %s440_s24, 0 }
   0xd   : > { %p454_p2 = scmp.eq.s32.totalorder %s3122_s1, 1  ;;  %p459_p3 = scmp.ne.s32.totalorder %s2988_s30, %s2984_s0 }
   0xe   : > { %p460_p4 = scmp.eq.s32.totalorder %s2439_s22, 1  ;;  %p2442_p7 = scmp.ge.s32.totalorder %s2996_s21, 1 }
   0xf   : > { %s3137_s25 = scalar_select %p441_p1, %s2992_s20, %s443_s23  }
  0x10   : > { %p3139_p5 = por %p454_p2, %p453_p0  ;;  %p3143_p6 = por %p460_p4, %p459_p3 }
  0x11   : > { %3628 = sst [smem:[#allocation8_spill]] %s3137_s25  ;;  %p539_p8 = scmp.lt.s32.totalorder %s2996_s21, 3 }
  0x12   : > { %s3630_s26 = scalar_select %p3143_p6, 1, 0 }
  0x13   : > { %p540_p9 = pnand %p2442_p7, %p539_p8 }
  0x14   : > { %3631 = sst [smem:[#allocation9_spill]] %s3630_s26  ;;  %p594_p10 = scmp.lt.s32.totalorder (!%p540_p9), %s3122_s1, 1 }
  0x15   : > { %543 = sbr.rel (%p540_p9) target bundleno = 2396 (0x95c), region = 96  ;;  %s3632_s23 = sld [smem:[#allocation10_spill]] (!%p540_p9) }
  0x16   : > { %s3633_s20 = sld [smem:[#allocation13_spill]] (!%p540_p9)  ;;  %s591_s0 = sand.u32 (!%p540_p9), 1, %s2988_s30  }
  0x17   : > { %s3635_s29 = sld [smem:[#allocation11_spill]] (!%p540_p9)  ;;  %s2443_s26 = sshll.u32 (!%p540_p9), %s591_s0, 3 }
  0x18   : > { %s593_s25 = scalar_lea.vmem (!%p540_p9), [#allocation2], %s2443_s26  ;;  %s3000_s22 = smov (!%p540_p9), [#allocation2]  }
  0x1a   : > { %s595_s27 = scalar_select %p594_p10, %s3122_s1, 1  ;;  %vm602_vm0 = vcmask 261120   ;;  %v2998_v9 = vmov 0.0   ;;  %vm2999_vm1 = vmmov 0   ;;  %v2882_v26 = vld [vmem:[%s3599_s5 + $0x8] sm:$0xff]   ;;  %v2883_v27 = vld [vmem:[%s3599_s5 + $0x18] sm:$0xff]  }
  0x1b   : > { %2617 = vmatprep.subr.bf16.mxu0 %v2998_v9  ;;  %2625 = vmatprep.subr.bf16.mxu1 %v2998_v9  ;;  %v2884_v28 = vld [vmem:[%s3599_s5] sm:$0xff]   ;;  %v2885_v29 = vld [vmem:[%s3599_s5 + $0x10] sm:$0xff]   ;;  %v2886_v30 = vld [vmem:[%s3599_s5 + $0x28] sm:$0xff]   ;;  %vm1403_vm2 = vcmask 64512   ;;  %vm1652_vm3 = vcmask 1043456  }
  0x1c   : > { %s2444_s28 = sshll.u32 %s595_s27, 3  ;;  %s3634_s2 = smov %s3633_s20  ;;  %v2874_v7 = vld [vmem:[%s3633_s20 + $0x8] sm:$0xff]   ;;  %2621 = vmatprep.mubr.msk.bf16.mxu0 %vm2999_vm1, %v2998_v9  ;;  %2629 = vmatprep.mubr.msk.bf16.mxu1 %vm2999_vm1, %v2998_v9  ;;  %v2887_v31 = vld [vmem:[%s3599_s5 + $0x38] sm:$0xff]   ;;  %v2888_v32 = vld [vmem:[%s3599_s5 + $0x20] sm:$0xff]  }
  0x1d   : > { %s597_s24 = scalar_lea.vmem %s3632_s23, %s2444_s28  ;;  %v2875_v8 = vld [vmem:[%s3634_s2 + $0x18] sm:$0xff]   ;;  %2618 = vmatpush3.bf16.msra.mxu0 %v2874_v7  ;;  %v2876_v10 = vld [vmem:[%s3634_s2] sm:$0xff]   ;;  %v2877_v11 = vld [vmem:[%s3634_s2 + $0x10] sm:$0xff]   ;;  %s3636_s23 = sld [smem:[#allocation12_spill]] }
  0x1e   : > { %v3154_v0 = vld [vmem:[%s597_s24] sm:$0xff]  ;;  %2626 = vmatpush3.bf16.msra.mxu1 %v2875_v8  ;;  %2619 = vmatprep.subr.bf16.mxu0 %v2998_v9  ;;  %v2878_v21 = vld [vmem:[%s3634_s2 + $0x28] sm:$0xff]   ;;  %v2879_v22 = vld [vmem:[%s3634_s2 + $0x38] sm:$0xff]   ;;  %s2533_s20 = sshll.u32 %s3122_s1, 7  ;;  %s2380_s24 = sshll.u32 %s593_s25, 4  ;;  %s3554_s24 = int_to_ptr.vmem [resolvable:$true] %s2380_s24 }
  0x1f   : > { %v603_v1 = vsel %vm602_vm0, %v3154_v0, 0.0  ;;  %2627 = vmatprep.subr.bf16.mxu1 %v2998_v9  ;;  %v2445_v16 = vld [vmem:[%s3635_s29] ss:$0 sm:$0xff]  ;;  %v2881_v25 = vld [vmem:[%s3634_s2 + $0x30] sm:$0xff]   ;;  %v2890_v34 = vld [vmem:[%s3601_s7 + $0x8] sm:$0xff]   ;;  %s3552_s28 = scalar_lea.hbm %s3613_s19, %s2533_s20  ;;  %s2367_s1 = scalar_lea.sflag [#allocation3], %s591_s0 }
  0x20   : > { %604 = vadd.xlane.f32.xlu0 %v603_v1  ;;  %v2880_v24 = vld [vmem:[%s3634_s2 + $0x20] sm:$0xff]   ;;  %v2889_v33 = vld [vmem:[%s3599_s5 + $0x30] sm:$0xff]   ;;  %v2891_v35 = vld [vmem:[%s3601_s7 + $0x18] sm:$0xff]   ;;  %s2936_s26 = scalar_lea.vmem %s3554_s24, 128 }
  0x21   : > { %2620 = vmatpush3.bf16.msra.mxu0 %v2876_v10  ;;  %v2892_v36 = vld [vmem:[%s3601_s7] sm:$0xff]   ;;  %v2893_v37 = vld [vmem:[%s3601_s7 + $0x10] sm:$0xff]   ;;  %v2894_v38 = vld [vmem:[%s3601_s7 + $0x28] sm:$0xff]   ;;  %p2937_p11 = scmp.ne.s32.totalorder %s3554_s24, %s2936_s26 }
  0x22   : > { %2628 = vmatpush3.bf16.msra.mxu1 %v2877_v11  ;;  %2633 = vmatprep.subr.bf16.mxu0 %v2998_v9  ;;  %v2895_v39 = vld [vmem:[%s3601_s7 + $0x38] sm:$0xff]   ;;  %v2896_v40 = vld [vmem:[%s3601_s7 + $0x20] sm:$0xff]   ;;  %v2897_v41 = vld [vmem:[%s3601_s7 + $0x30] sm:$0xff]  }
  0x23   : > { %2641 = vmatprep.subr.bf16.mxu1 %v2998_v9  ;;  %v2446_v18 = vld [vmem:[%s3636_s23] ss:$0 sm:$0xff]  ;;  %v2464_v59 = vld [vmem:[%s3600_s6 + $0x1] ss:$0 sm:$0xff]  ;;  %p2938_p12 = pnand %p2937_p11, %p3139_p5  ;;  %s2940_s23 = sshll.u32 %s3000_s22, 4  ;;  %s2941_s23 = int_to_ptr.vmem [resolvable:$false] %s2940_s23 }
  0x24   : > { %v2463_v58 = vld [vmem:[%s3600_s6] ss:$0 sm:$0xff]  ;;  %v2448_v61 = vld [vmem:[%s3598_s4 + $0x1] ss:$0 sm:$0xff]  ;;  %s2942_s20 = scalar_lea.vmem %s2941_s23, 256  ;;  %p2943_p0 = scmp.lt.s32.totalorder %s3554_s24, %s2941_s23 }
  0x25   : > { %v2447_v60 = vld [vmem:[%s3598_s4] ss:$0 sm:$0xff]  ;;  %p2939_p13 = pneg %p2938_p12  ;;  %p2944_p1 = scmp.lt.s32.totalorder %s2942_s20, %s2936_s26 }
  0x27   : > { %p2945_p2 = por %p2944_p1, %p2943_p0 }
  0x29   : > { %p2946_p3 = pnand %p2945_p2, %p2939_p13 }
  0xa9   : > { %v605_v2 = vpop.xlane.xlu0 %604 }
  0xaa   : > { %v607_v3 = vmul.f32 0.03125, %v605_v2 }
  0xac   : > { %v608_v4 = vsub.f32 %v3154_v0, %v607_v3 }
  0xae   : > { %v609_v5 = vmul.f32 %v608_v4, %v608_v4 }
  0xb0   : > { %v610_v6 = vsel %vm602_vm0, %v609_v5, 0.0 }
  0xb1   : > { %611 = vadd.xlane.f32.xlu0 %v610_v6 }
 0x13a   : > { %v612_v12 = vpop.xlane.xlu0 %611 }
 0x13b   : > { %v613_v13 = vmul.f32 0.03125, %v612_v12 }
 0x13d   : > { %v614_v14 = vadd.f32 1e-05, %v613_v13 }
 0x13f   : > { %2916 = vrsqrt.f32 %v614_v14  ;;  %v2465_v14 = vld [vmem:[%s3600_s6 + $0x2] ss:$0 sm:$0xff] }
 0x14c   : > { %v2917_v15 = vpop.eup %2916 }
 0x14d   : > { %v616_v17 = vmul.f32 %v2917_v15, %v608_v4 }
 0x14f   : > { %v623_v19 = vmul.f32 %v2445_v16, %v616_v17 }
 0x151   : > { %v630_v20 = vadd.f32 %v2446_v18, %v623_v19  ;;  %v2466_v19 = vld [vmem:[%s3600_s6 + $0x3] ss:$0 sm:$0xff] }
 0x153   : > { %v3194_v23 = vpack.c.bf16 %v630_v20, %v630_v20  ;;  %v2449_v20 = vld [vmem:[%s3598_s4 + $0x2] ss:$0 sm:$0xff] }
 0x155   : > { %2622 = vmatmul.mubr.msk.bf16.vlgmr.msra.gmra.mxu0 %vm602_vm0, %v3194_v23  ;;  %2630 = vmatmul.mubr.msk.bf16.vlgmr.msra.gmra.mxu1 %vm602_vm0, %v3194_v23 }
 0x156   : > { %2634 = vmatpush3.bf16.msra.mxu0 %v2878_v21  ;;  %2642 = vmatpush3.bf16.msra.mxu1 %v2879_v22  ;;  %v2450_v21 = vld [vmem:[%s3598_s4 + $0x3] ss:$0 sm:$0xff] }
 0x157   : > { %2635 = vmatprep.subr.bf16.mxu0 %v2998_v9  ;;  %2643 = vmatprep.subr.bf16.mxu1 %v2998_v9 }
 0x158   : > { %2637 = vmatprep.mubr.msk.bf16.mxu0 %vm2999_vm1, %v2998_v9  ;;  %2645 = vmatprep.mubr.msk.bf16.mxu1 %vm2999_vm1, %v2998_v9 }
 0x15a   : > { %2636 = vmatpush3.bf16.msra.mxu0 %v2880_v24  ;;  %2644 = vmatpush3.bf16.msra.mxu1 %v2881_v25 }
 0x15b   : > { %2649 = vmatprep.subr.bf16.mxu0 %v2998_v9  ;;  %2657 = vmatprep.subr.bf16.mxu1 %v2998_v9 }
 0x15d   : > { %2638 = vmatmul.mubr.msk.bf16.vlgmr.msra.gmra.mxu0 %vm602_vm0, %v3194_v23  ;;  %2646 = vmatmul.mubr.msk.bf16.vlgmr.msra.gmra.mxu1 %vm602_vm0, %v3194_v23 }
 0x15e   : > { %2650 = vmatpush3.bf16.msra.mxu0 %v2882_v26  ;;  %2658 = vmatpush3.bf16.msra.mxu1 %v2883_v27 }
 0x15f   : > { %2651 = vmatprep.subr.bf16.mxu0 %v2998_v9  ;;  %2659 = vmatprep.subr.bf16.mxu1 %v2998_v9 }
 0x160   : > { %2653 = vmatprep.mubr.msk.bf16.mxu0 %vm2999_vm1, %v2998_v9  ;;  %2661 = vmatprep.mubr.msk.bf16.mxu1 %vm2999_vm1, %v2998_v9 }
 0x162   : > { %2652 = vmatpush3.bf16.msra.mxu0 %v2884_v28  ;;  %2660 = vmatpush3.bf16.msra.mxu1 %v2885_v29 }
 0x163   : > { %2665 = vmatprep.subr.bf16.mxu0 %v2998_v9  ;;  %2673 = vmatprep.subr.bf16.mxu1 %v2998_v9 }
 0x165   : > { %2654 = vmatmul.mubr.msk.bf16.vlgmr.msra.gmra.mxu0 %vm602_vm0, %v3194_v23  ;;  %2662 = vmatmul.mubr.msk.bf16.vlgmr.msra.gmra.mxu1 %vm602_vm0, %v3194_v23 }
 0x166   : > { %2666 = vmatpush3.bf16.msra.mxu0 %v2886_v30  ;;  %2674 = vmatpush3.bf16.msra.mxu1 %v2887_v31 }
 0x167   : > { %2667 = vmatprep.subr.bf16.mxu0 %v2998_v9  ;;  %2675 = vmatprep.subr.bf16.mxu1 %v2998_v9 }
 0x168   : > { %2669 = vmatprep.mubr.msk.bf16.mxu0 %vm2999_vm1, %v2998_v9  ;;  %2677 = vmatprep.mubr.msk.bf16.mxu1 %vm2999_vm1, %v2998_v9 }
 0x16a   : > { %2668 = vmatpush3.bf16.msra.mxu0 %v2888_v32  ;;  %2676 = vmatpush3.bf16.msra.mxu1 %v2889_v33 }
 0x16b   : > { %2681 = vmatprep.subr.bf16.mxu0 %v2998_v9  ;;  %2689 = vmatprep.subr.bf16.mxu1 %v2998_v9 }
 0x16d   : > { %2670 = vmatmul.mubr.msk.bf16.vlgmr.msra.gmra.mxu0 %vm602_vm0, %v3194_v23  ;;  %2678 = vmatmul.mubr.msk.bf16.vlgmr.msra.gmra.mxu1 %vm602_vm0, %v3194_v23 }
 0x16e   : > { %2682 = vmatpush3.bf16.msra.mxu0 %v2890_v34  ;;  %2690 = vmatpush3.bf16.msra.mxu1 %v2891_v35 }
 0x16f   : > { %2683 = vmatprep.subr.bf16.mxu0 %v2998_v9  ;;  %2691 = vmatprep.subr.bf16.mxu1 %v2998_v9 }
 0x170   : > { %2685 = vmatprep.mubr.msk.bf16.mxu0 %vm2999_vm1, %v2998_v9  ;;  %2693 = vmatprep.mubr.msk.bf16.mxu1 %vm2999_vm1, %v2998_v9 }
 0x172   : > { %2684 = vmatpush3.bf16.msra.mxu0 %v2892_v36  ;;  %2692 = vmatpush3.bf16.msra.mxu1 %v2893_v37 }
 0x173   : > { %2697 = vmatprep.subr.bf16.mxu0 %v2998_v9  ;;  %2705 = vmatprep.subr.bf16.mxu1 %v2998_v9 }
 0x175   : > { %2686 = vmatmul.mubr.msk.bf16.vlgmr.msra.gmra.mxu0 %vm602_vm0, %v3194_v23  ;;  %2694 = vmatmul.mubr.msk.bf16.vlgmr.msra.gmra.mxu1 %vm602_vm0, %v3194_v23 }
 0x176   : > { %2698 = vmatpush3.bf16.msra.mxu0 %v2894_v38  ;;  %2706 = vmatpush3.bf16.msra.mxu1 %v2895_v39 }
 0x177   : > { %2699 = vmatprep.subr.bf16.mxu0 %v2998_v9  ;;  %2707 = vmatprep.subr.bf16.mxu1 %v2998_v9 }
 0x178   : > { %2701 = vmatprep.mubr.msk.bf16.mxu0 %vm2999_vm1, %v2998_v9  ;;  %2709 = vmatprep.mubr.msk.bf16.mxu1 %vm2999_vm1, %v2998_v9 }
 0x17a   : > { %2700 = vmatpush3.bf16.msra.mxu0 %v2896_v40  ;;  %2708 = vmatpush3.bf16.msra.mxu1 %v2897_v41  ;;  %v2479_v40 = vld [vmem:[%s3602_s8] ss:$0 sm:$0xff]  ;;  %v2480_v41 = vld [vmem:[%s3602_s8 + $0x1] ss:$0 sm:$0xff] }
 0x17b   : > { %2713 = vmatprep.subr.bf16.mxu0 %v2998_v9  ;;  %2719 = vmatprep.subr.bf16.mxu1 %v2998_v9 }
 0x17d   : > { %2702 = vmatmul.mubr.msk.bf16.vlgmr.msra.gmra.mxu0 %vm602_vm0, %v3194_v23  ;;  %2710 = vmatmul.mubr.msk.bf16.vlgmr.msra.gmra.mxu1 %vm602_vm0, %v3194_v23 }
 0x17e   : > { %2715 = vmatprep.mubr.msk.bf16.mxu0 %vm2999_vm1, %v2998_v9  ;;  %2721 = vmatprep.mubr.msk.bf16.mxu1 %vm2999_vm1, %v2998_v9 }
 0x215   : > { %v725_v42 = vpop.f32.mrf.mxu0  ;;  %v777_v43 = vpop.f32.mrf.mxu1 }
 0x216   : > { %v726_v3 = vadd.f32 %v2447_v60, %v725_v42  ;;  %v778_v4 = vadd.f32 %v2448_v61, %v777_v43 }
 0x217   : > { %v2623_v44 = vpop.f32.mrf.mxu0  ;;  %v2631_v45 = vpop.f32.mrf.mxu1 }
 0x218   : > { %v1391_v15 = vmul.f32 0.35355338, %v726_v3  ;;  %v1392_v16 = vmul.f32 0.35355338, %v778_v4 }
 0x219   : > { %v728_v46 = vpop.f32.mrf.mxu0  ;;  %v780_v47 = vpop.f32.mrf.mxu1 }
 0x21a   : > { %v1395_v26 = vpack.c.bf16 %v1391_v15, %v1391_v15  ;;  %v1396_v27 = vpack.c.bf16 %v1392_v16, %v1392_v16 }
 0x21b   : > { %v2624_v48 = vpop.f32.mrf.mxu0  ;;  %v2632_v49 = vpop.f32.mrf.mxu1 }
 0x21d   : > { %v829_v50 = vpop.f32.mrf.mxu0  ;;  %v881_v51 = vpop.f32.mrf.mxu1 }
 0x21e   : > { %v830_v30 = vadd.f32 %v2449_v20, %v829_v50  ;;  %v882_v31 = vadd.f32 %v2450_v21, %v881_v51 }
 0x21f   : > { %v2639_v52 = vpop.f32.mrf.mxu0  ;;  %v2647_v53 = vpop.f32.mrf.mxu1 }
 0x220   : > { %v1393_v42 = vmul.f32 0.35355338, %v830_v30  ;;  %v1394_v43 = vmul.f32 0.35355338, %v882_v31 }
 0x221   : > { %v832_v54 = vpop.f32.mrf.mxu0  ;;  %v884_v55 = vpop.f32.mrf.mxu1 }
 0x222   : > { %v1397_v50 = vpack.c.bf16 %v1393_v42, %v1393_v42  ;;  %v1398_v51 = vpack.c.bf16 %v1394_v43, %v1394_v43 }
 0x223   : > { %v2640_v56 = vpop.f32.mrf.mxu0  ;;  %v2648_v57 = vpop.f32.mrf.mxu1 }
 0x225   : > { %v977_v62 = vpop.f32.mrf.mxu0  ;;  %v1029_v63 = vpop.f32.mrf.mxu1 }
 0x226   : > { %v978_v1 = vadd.f32 %v2463_v58, %v977_v62  ;;  %v1030_v2 = vadd.f32 %v2464_v59, %v1029_v63 }
 0x227   : > { %v2655_v5 = vpop.f32.mrf.mxu0  ;;  %v2663_v6 = vpop.f32.mrf.mxu1 }
 0x228   : > { %v1399_v7 = vpack.c.bf16 %v978_v1, %v978_v1  ;;  %v1400_v8 = vpack.c.bf16 %v1030_v2, %v1030_v2  ;;  %v1588_v5 = vlaneseq }
 0x229   : > { %v980_v10 = vpop.f32.mrf.mxu0  ;;  %v1032_v11 = vpop.f32.mrf.mxu1 }
 0x22a   : > { %v1408_v12 = vsel %vm1403_vm2, %v1399_v7, 0  ;;  %v1454_v13 = vsel %vm1403_vm2, %v1400_v8, 0  ;;  %v1589_v6 = vshrl.u32 %v1588_v5, 7  ;;  %v1591_v7 = vand.u32 127, %v1588_v5 }
 0x22b   : > { %v2656_v17 = vpop.f32.mrf.mxu0  ;;  %v2664_v18 = vpop.f32.mrf.mxu1  ;;  %2714 = vmatpush3.bf16.xpose.msra.mxu0 %v1408_v12  ;;  %2720 = vmatpush3.bf16.xpose.msra.mxu1 %v1454_v13 }
 0x22c   : > { %2725 = vmatprep.subr.bf16.mxu0 %v2998_v9  ;;  %2731 = vmatprep.subr.bf16.mxu1 %v2998_v9  ;;  %vm1592_vm4 = vcmp.le.s32.totalorder %v1591_v7, %v1589_v6 }
 0x22d   : > { %v1081_v22 = vpop.f32.mrf.mxu0  ;;  %v1133_v23 = vpop.f32.mrf.mxu1 }
 0x22e   : > { %v1082_v24 = vadd.f32 %v2465_v14, %v1081_v22  ;;  %v1134_v25 = vadd.f32 %v2466_v19, %v1133_v23 }
 0x22f   : > { %v2671_v28 = vpop.f32.mrf.mxu0  ;;  %v2679_v29 = vpop.f32.mrf.mxu1 }
 0x230   : > { %v1401_v32 = vpack.c.bf16 %v1082_v24, %v1082_v24  ;;  %v1402_v33 = vpack.c.bf16 %v1134_v25, %v1134_v25 }
 0x231   : > { %v1084_v34 = vpop.f32.mrf.mxu0  ;;  %v1136_v35 = vpop.f32.mrf.mxu1 }
 0x232   : > { %v1500_v36 = vsel %vm1403_vm2, %v1401_v32, 0  ;;  %v1546_v37 = vsel %vm1403_vm2, %v1402_v33, 0  ;;  %2716 = vmatmul.mubr.msk.bf16.vlgmr.msra.gmra.mxu0 %vm1403_vm2, %v1395_v26  ;;  %2722 = vmatmul.mubr.msk.bf16.vlgmr.msra.gmra.mxu1 %vm1403_vm2, %v1396_v27 }
 0x233   : > { %v2672_v38 = vpop.f32.mrf.mxu0  ;;  %v2680_v39 = vpop.f32.mrf.mxu1  ;;  %2726 = vmatpush3.bf16.xpose.msra.mxu0 %v1500_v36  ;;  %2732 = vmatpush3.bf16.xpose.msra.mxu1 %v1546_v37 }
 0x234   : > { %2727 = vmatprep.mubr.msk.bf16.mxu0 %vm2999_vm1, %v2998_v9  ;;  %2733 = vmatprep.mubr.msk.bf16.mxu1 %vm2999_vm1, %v2998_v9 }
 0x235   : > { %v1229_v44 = vpop.f32.mrf.mxu0  ;;  %v1281_v45 = vpop.f32.mrf.mxu1  ;;  %2737 = vmatprep.subr.bf16.mxu0 %v2998_v9  ;;  %2743 = vmatprep.subr.bf16.mxu1 %v2998_v9 }
 0x236   : > { %v1230_v46 = vadd.f32 %v2479_v40, %v1229_v44  ;;  %v1282_v47 = vadd.f32 %v2480_v41, %v1281_v45 }
 0x237   : > { %v2687_v48 = vpop.f32.mrf.mxu0  ;;  %v2695_v49 = vpop.f32.mrf.mxu1 }
 0x238   : > { %v1645_v52 = vpack.c.bf16 %v1230_v46, %v1230_v46  ;;  %v1646_v53 = vpack.c.bf16 %v1282_v47, %v1282_v47 }
 0x239   : > { %v1232_v54 = vpop.f32.mrf.mxu0  ;;  %v1284_v55 = vpop.f32.mrf.mxu1 }
 0x23a   : > { %v1654_v56 = vsel %vm1652_vm3, %v1645_v52, 0  ;;  %v1700_v57 = vsel %vm1652_vm3, %v1646_v53, 0  ;;  %2728 = vmatmul.mubr.msk.bf16.vlgmr.msra.gmra.mxu0 %vm1403_vm2, %v1397_v50  ;;  %2734 = vmatmul.mubr.msk.bf16.vlgmr.msra.gmra.mxu1 %vm1403_vm2, %v1398_v51  ;;  %v2481_v55 = vld [vmem:[%s3602_s8 + $0x2] ss:$0 sm:$0xff] }
 0x23b   : > { %v2688_v58 = vpop.f32.mrf.mxu0  ;;  %v2696_v59 = vpop.f32.mrf.mxu1  ;;  %2738 = vmatpush3.bf16.msra.mxu0 %v1654_v56  ;;  %2744 = vmatpush3.bf16.msra.mxu1 %v1700_v57 }
 0x23c   : > { %2739 = vmatprep.mubr.msk.bf16.mxu0 %vm2999_vm1, %v2998_v9  ;;  %2749 = vmatprep.subr.bf16.mxu0 %v2998_v9  ;;  %v2482_v59 = vld [vmem:[%s3602_s8 + $0x3] ss:$0 sm:$0xff] }
 0x23d   : > { %v3369_v60 = vpop.f32.mrf.mxu0  ;;  %v3371_v61 = vpop.f32.mrf.mxu1  ;;  %2745 = vmatprep.mubr.msk.bf16.mxu1 %vm2999_vm1, %v2998_v9  ;;  %2755 = vmatprep.subr.bf16.mxu1 %v2998_v9 }
 0x23e   : > { %v1334_v58 = vadd.f32 %v2481_v55, %v3369_v60 }
 0x23f   : > { %v2703_v62 = vpop.f32.mrf.mxu0  ;;  %v2711_v63 = vpop.f32.mrf.mxu1 }
 0x240   : > { %v1647_v63 = vpack.c.bf16 %v1334_v58, %v1334_v58 }
 0x241   : > { %v1336_v1 = vpop.f32.mrf.mxu0  ;;  %v1388_v2 = vpop.f32.mrf.mxu1 }
 0x242   : > { %v1386_v1 = vadd.f32 %v2482_v59, %v3371_v61  ;;  %v1746_v5 = vsel %vm1652_vm3, %v1647_v63, 0  ;;  %v2507_v63 = vld [vmem:[%s3604_s10] ss:$0 sm:$0xff] }
 0x243   : > { %v2704_v3 = vpop.f32.mrf.mxu0  ;;  %v2712_v4 = vpop.f32.mrf.mxu1 }
 0x244   : > { %v1648_v6 = vpack.c.bf16 %v1386_v1, %v1386_v1 }
 0x246   : > { %v1792_v61 = vsel %vm1652_vm3, %v1648_v6, 0 }
 0x2f2   : > { %v1444_v8 = vpop.f32.mrf.mxu0  ;;  %v1490_v10 = vpop.f32.mrf.mxu1 }
 0x2f3   : > { %v1593_v11 = vsel %vm1592_vm4, %v1444_v8, -1e+30  ;;  %v1594_v15 = vsel %vm1592_vm4, %v1490_v10, -1e+30 }
 0x2f4   : > { %v2717_v12 = vpop.f32.mrf.mxu0  ;;  %v2723_v13 = vpop.f32.mrf.mxu1  ;;  %v1597_v14 = vsel %vm1403_vm2, %v1593_v11, -inf  ;;  %v1600_v20 = vsel %vm1403_vm2, %v1594_v15, -inf }
 0x2f5   : > { %1598 = vmax.xlane.f32.xlu1 %v1597_v14 }
 0x2f6   : > { %v1447_v16 = vpop.f32.mrf.mxu0  ;;  %v1493_v17 = vpop.f32.mrf.mxu1 }
 0x2f7   : > { %v1839_v17 = vld [vmem:[%s3603_s9 + $0x4] sm:$0xf] }
 0x2f8   : > { %v2718_v18 = vpop.f32.mrf.mxu0  ;;  %v2724_v19 = vpop.f32.mrf.mxu1 }
 0x2f9   : > { %1601 = vmax.xlane.f32.xlu1 %v1600_v20  ;;  %v1892_v18 = vsel %vm1652_vm3, %v1839_v17, 0  ;;  %v1840_v19 = vld [vmem:[%s3603_s9 + $0x8] sm:$0xf]  ;;  %v2903_v17 = vld [vmem:[%s3609_s15 + $0x20] sm:$0xff]  }
 0x2fa   : > { %v1536_v21 = vpop.f32.mrf.mxu0  ;;  %v1582_v22 = vpop.f32.mrf.mxu1 }
 0x2fb   : > { %v1595_v23 = vsel %vm1592_vm4, %v1536_v21, -1e+30  ;;  %v1596_v24 = vsel %vm1592_vm4, %v1582_v22, -1e+30  ;;  %v1938_v22 = vsel %vm1652_vm3, %v1840_v19, 0  ;;  %v2905_v19 = vld [vmem:[%s3609_s15 + $0x10] sm:$0xff]  }
 0x2fc   : > { %v2729_v25 = vpop.f32.mrf.mxu0  ;;  %v2735_v26 = vpop.f32.mrf.mxu1  ;;  %v1606_v27 = vsel %vm1403_vm2, %v1596_v24, -inf  ;;  %v1603_v28 = vsel %vm1403_vm2, %v1595_v23, -inf }
 0x2fd   : > { %1607 = vmax.xlane.f32.xlu1 %v1606_v27  ;;  %1604 = vmax.xlane.f32.xlu0 %v1603_v28 }
 0x2fe   : > { %v1539_v29 = vpop.f32.mrf.mxu0  ;;  %v1585_v30 = vpop.f32.mrf.mxu1 }
 0x300   : > { %v2730_v31 = vpop.f32.mrf.mxu0  ;;  %v2736_v32 = vpop.f32.mrf.mxu1 }
 0x37e   : > { %v1599_v33 = vpop.xlane.xlu1 %1598 }
 0x37f   : > { %v1609_v34 = vsub.f32 %v1593_v11, %v1599_v33  ;;  %v1838_v11 = vld [vmem:[%s3603_s9] sm:$0xf] }
 0x381   : > { %v1613_v35 = vmul.f32 1.442695, %v1609_v34 }
 0x382   : > { %v1602_v36 = vpop.xlane.xlu1 %1601 }
 0x383   : > { %2918 = vpow2.f32 %v1613_v35  ;;  %v1610_v37 = vsub.f32 %v1594_v15, %v1602_v36  ;;  %v1846_v15 = vsel %vm1652_vm3, %v1838_v11, 0 }
 0x385   : > { %v1615_v38 = vmul.f32 1.442695, %v1610_v37 }
 0x386   : > { %v1608_v39 = vpop.xlane.xlu1 %1607  ;;  %v1605_v40 = vpop.xlane.xlu0 %1604 }
 0x387   : > { %2920 = vpow2.f32 %v1615_v38  ;;  %v1612_v41 = vsub.f32 %v1596_v24, %v1608_v39  ;;  %v1611_v42 = vsub.f32 %v1595_v23, %v1605_v40  ;;  %v1841_v24 = vld [vmem:[%s3603_s9 + $0xc] sm:$0xf] }
 0x388   : > { %v1984_v28 = vsel %vm1652_vm3, %v1841_v24, 0  ;;  %v2508_v24 = vld [vmem:[%s3605_s11] ss:$0 sm:$0xff] }
 0x389   : > { %v1619_v43 = vmul.f32 1.442695, %v1612_v41  ;;  %v1617_v44 = vmul.f32 1.442695, %v1611_v42 }
 0x38b   : > { %2922 = vpow2.f32 %v1619_v43 }
 0x38c   : > { %2924 = vpow2.f32 %v1617_v44 }
 0x390   : > { %v2919_v45 = vpop.eup %2918 }
 0x391   : > { %v1621_v46 = vsel %vm1403_vm2, %v2919_v45, 0.0 }
 0x392   : > { %1622 = vadd.xlane.f32.xlu0 %v1621_v46 }
 0x394   : > { %v2921_v47 = vpop.eup %2920 }
 0x395   : > { %v1624_v48 = vsel %vm1403_vm2, %v2921_v47, 0.0 }
 0x396   : > { %1625 = vadd.xlane.f32.xlu1 %v1624_v48 }
 0x398   : > { %v2923_v49 = vpop.eup %2922 }
 0x399   : > { %v2925_v50 = vpop.eup %2924  ;;  %v1630_v51 = vsel %vm1403_vm2, %v2923_v49, 0.0 }
 0x39a   : > { %1631 = vadd.xlane.f32.xlu1 %v1630_v51  ;;  %v1627_v52 = vsel %vm1403_vm2, %v2925_v50, 0.0 }
 0x39b   : > { %1628 = vadd.xlane.f32.xlu0 %v1627_v52 }
 0x41b   : > { %v1623_v53 = vpop.xlane.xlu0 %1622 }
 0x41c   : > { %2926 = vrcp.f32 %v1623_v53 }
 0x41f   : > { %v1626_v54 = vpop.xlane.xlu1 %1625 }
 0x420   : > { %2928 = vrcp.f32 %v1626_v54 }
 0x423   : > { %v1632_v56 = vpop.xlane.xlu1 %1631 }
 0x424   : > { %2930 = vrcp.f32 %v1632_v56  ;;  %v1629_v57 = vpop.xlane.xlu0 %1628 }
 0x425   : > { %2932 = vrcp.f32 %v1629_v57 }
 0x429   : > { %v2927_v62 = vpop.eup %2926 }
 0x42a   : > { %v1637_v2 = vmul.f32 %v2927_v62, %v2919_v45 }
 0x42c   : > { %v1641_v3 = vpack.c.bf16 %v1637_v2, %v1637_v2 }
 0x42d   : > { %v2929_v4 = vpop.eup %2928 }
 0x42e   : > { %2740 = vmatmul.mubr.msk.bf16.vlgmr.msra.gmra.mxu0 %vm1403_vm2, %v1641_v3  ;;  %v1638_v7 = vmul.f32 %v2929_v4, %v2921_v47 }
 0x42f   : > { %2750 = vmatpush3.bf16.msra.mxu0 %v1746_v5  ;;  %2751 = vmatprep.mubr.msk.bf16.mxu0 %vm2999_vm1, %v2998_v9 }
 0x430   : > { %v1642_v60 = vpack.c.bf16 %v1638_v7, %v1638_v7  ;;  %2761 = vmatprep.subr.bf16.mxu0 %v2998_v9 }
 0x431   : > { %v2931_v8 = vpop.eup %2930 }
 0x432   : > { %v2933_v10 = vpop.eup %2932  ;;  %2746 = vmatmul.mubr.msk.bf16.vlgmr.msra.gmra.mxu1 %vm1403_vm2, %v1642_v60  ;;  %v1640_v13 = vmul.f32 %v2931_v8, %v2923_v49 }
 0x433   : > { %2756 = vmatpush3.bf16.msra.mxu1 %v1792_v61  ;;  %v1639_v12 = vmul.f32 %v2933_v10, %v2925_v50  ;;  %2757 = vmatprep.mubr.msk.bf16.mxu1 %vm2999_vm1, %v2998_v9 }
 0x434   : > { %2767 = vmatprep.subr.bf16.mxu1 %v2998_v9  ;;  %v1644_v16 = vpack.c.bf16 %v1640_v13, %v1640_v13  ;;  %v2898_v13 = vld [vmem:[%s3607_s13 + $0x8] sm:$0xff]  }
 0x435   : > { %v1643_v14 = vpack.c.bf16 %v1639_v12, %v1639_v12 }
 0x437   : > { %2752 = vmatmul.mubr.msk.bf16.vlgmr.msra.gmra.mxu0 %vm1403_vm2, %v1643_v14  ;;  %v2900_v14 = vld [vmem:[%s3609_s15 + $0x38] sm:$0xff]  }
 0x438   : > { %2762 = vmatpush3.bf16.msra.mxu0 %v1846_v15  ;;  %2763 = vmatprep.mubr.msk.bf16.mxu0 %vm2999_vm1, %v2998_v9  ;;  %v2901_v15 = vld [vmem:[%s3609_s15 + $0x30] sm:$0xff]  }
 0x439   : > { %2773 = vmatprep.subr.bf16.mxu0 %v2998_v9 }
 0x43a   : > { %2758 = vmatmul.mubr.msk.bf16.vlgmr.msra.gmra.mxu1 %vm1403_vm2, %v1644_v16  ;;  %v2902_v16 = vld [vmem:[%s3609_s15 + $0x28] sm:$0xff]  }
 0x43b   : > { %2769 = vmatprep.mubr.msk.bf16.mxu1 %vm2999_vm1, %v2998_v9  ;;  %2768 = vmatpush3.bf16.msra.mxu1 %v1892_v18  ;;  %v2904_v18 = vld [vmem:[%s3609_s15 + $0x18] sm:$0xff]  }
 0x43c   : > { %2779 = vmatprep.subr.bf16.mxu1 %v2998_v9 }
 0x4ee   : > { %v1690_v20 = vpop.f32.mrf.mxu0 }
 0x4ef   : > { %v1834_v21 = vpack.c.bf16 %v1690_v20, %v1690_v20 }
 0x4f0   : > { %v2741_v23 = vpop.f32.mrf.mxu0 }
 0x4f1   : > { %2764 = vmatmul.mubr.msk.bf16.vlgmr.msra.gmra.mxu0 %vm1403_vm2, %v1834_v21 }
 0x4f2   : > { %v1693_v25 = vpop.f32.mrf.mxu0  ;;  %v1736_v26 = vpop.f32.mrf.mxu1  ;;  %2774 = vmatpush3.bf16.msra.mxu0 %v1938_v22  ;;  %2775 = vmatprep.mubr.msk.bf16.mxu0 %vm2999_vm1, %v2998_v9 }
 0x4f3   : > { %v1835_v27 = vpack.c.bf16 %v1736_v26, %v1736_v26  ;;  %2785 = vmatprep.subr.bf16.mxu0 %v2998_v9  ;;  %v2509_v26 = vld [vmem:[%s3606_s12] ss:$0 sm:$0xff] }
 0x4f4   : > { %v2742_v29 = vpop.f32.mrf.mxu0  ;;  %v2747_v30 = vpop.f32.mrf.mxu1 }
 0x4f5   : > { %2770 = vmatmul.mubr.msk.bf16.vlgmr.msra.gmra.mxu1 %vm1403_vm2, %v1835_v27  ;;  %v2906_v30 = vld [vmem:[%s3609_s15 + $0x8] sm:$0xff]  }
 0x4f6   : > { %v1739_v31 = vpop.f32.mrf.mxu1  ;;  %2780 = vmatpush3.bf16.msra.mxu1 %v1984_v28  ;;  %2781 = vmatprep.mubr.msk.bf16.mxu1 %vm2999_vm1, %v2998_v9 }
 0x4f7   : > { %v1782_v32 = vpop.f32.mrf.mxu0  ;;  %2793 = vmatprep.subr.bf16.mxu1 %v2998_v9  ;;  %v2907_v31 = vld [vmem:[%s3609_s15] sm:$0xff]  }
 0x4f8   : > { %v1836_v33 = vpack.c.bf16 %v1782_v32, %v1782_v32  ;;  %v2748_v34 = vpop.f32.mrf.mxu1  ;;  %v2908_v32 = vld [vmem:[%s3611_s17 + $0x38] sm:$0xff]  }
 0x4f9   : > { %v2753_v35 = vpop.f32.mrf.mxu0  ;;  %v2910_v34 = vld [vmem:[%s3611_s17 + $0x28] sm:$0xff]  }
 0x4fa   : > { %2776 = vmatmul.mubr.msk.bf16.vlgmr.msra.gmra.mxu0 %vm1403_vm2, %v1836_v33  ;;  %v1828_v36 = vpop.f32.mrf.mxu1  ;;  %v2909_v33 = vld [vmem:[%s3611_s17 + $0x30] sm:$0xff]   ;;  %v2911_v35 = vld [vmem:[%s3611_s17 + $0x20] sm:$0xff]  }
 0x4fb   : > { %v1785_v37 = vpop.f32.mrf.mxu0  ;;  %v1837_v38 = vpack.c.bf16 %v1828_v36, %v1828_v36  ;;  %2789 = vmatprep.mubr.msk.bf16.mxu0 %vm2999_vm1, %v2998_v9  ;;  %2786 = vmatpush3.bf16.msra.mxu0 %v2898_v13  ;;  %v2912_v36 = vld [vmem:[%s3611_s17 + $0x18] sm:$0xff]  }
 0x4fc   : > { %v2759_v39 = vpop.f32.mrf.mxu1  ;;  %2787 = vmatprep.subr.bf16.mxu0 %v2998_v9  ;;  %v2913_v37 = vld [vmem:[%s3611_s17 + $0x10] sm:$0xff]  }
 0x4fd   : > { %v2754_v40 = vpop.f32.mrf.mxu0  ;;  %2782 = vmatmul.mubr.msk.bf16.vlgmr.msra.gmra.mxu1 %vm1403_vm2, %v1837_v38  ;;  %v2510_v38 = vld [vmem:[%s3608_s14] ss:$0 sm:$0xff] }
 0x4fe   : > { %v1831_v41 = vpop.f32.mrf.mxu1  ;;  %2809 = vmatprep.mubr.msk.bf16.mxu1 %vm2999_vm1, %v2998_v9  ;;  %2794 = vmatpush3.bf16.msra.mxu1 %v2900_v14 }
 0x4ff   : > { %2795 = vmatprep.subr.bf16.mxu1 %v2998_v9 }
 0x500   : > { %v2760_v42 = vpop.f32.mrf.mxu1 }
 0x502   : > { %2796 = vmatpush3.bf16.msra.mxu1 %v2901_v15 }
 0x503   : > { %2797 = vmatprep.subr.bf16.mxu1 %v2998_v9 }
 0x506   : > { %2798 = vmatpush3.bf16.msra.mxu1 %v2902_v16 }
 0x507   : > { %2799 = vmatprep.subr.bf16.mxu1 %v2998_v9 }
 0x50a   : > { %2800 = vmatpush3.bf16.msra.mxu1 %v2903_v17 }
 0x50b   : > { %2801 = vmatprep.subr.bf16.mxu1 %v2998_v9 }
 0x50e   : > { %2802 = vmatpush3.bf16.msra.mxu1 %v2904_v18 }
 0x50f   : > { %2803 = vmatprep.subr.bf16.mxu1 %v2998_v9 }
 0x512   : > { %2804 = vmatpush3.bf16.msra.mxu1 %v2905_v19 }
 0x513   : > { %2805 = vmatprep.subr.bf16.mxu1 %v2998_v9 }
 0x516   : > { %2806 = vmatpush3.bf16.msra.mxu1 %v2906_v30 }
 0x517   : > { %2807 = vmatprep.subr.bf16.mxu1 %v2998_v9 }
 0x51a   : > { %2808 = vmatpush3.bf16.msra.mxu1 %v2907_v31 }
 0x5b1   : > { %v1882_v43 = vpop.f32.mrf.mxu0 }
 0x5b2   : > { %v2026_v51 = vsel %vm602_vm0, %v1882_v43, 0.0 }
 0x5b3   : > { %v2765_v44 = vpop.f32.mrf.mxu0 }
 0x5b5   : > { %v1885_v45 = vpop.f32.mrf.mxu0  ;;  %v1928_v46 = vpop.f32.mrf.mxu1 }
 0x5b6   : > { %v2027_v49 = vsel %vm602_vm0, %v1928_v46, 0.0  ;;  %v2914_v46 = vld [vmem:[%s3611_s17 + $0x8] sm:$0xff]  }
 0x5b7   : > { %v2766_v47 = vpop.f32.mrf.mxu0  ;;  %v2771_v48 = vpop.f32.mrf.mxu1  ;;  %v2028_v53 = vadd.f32 %v2027_v49, %v2026_v51 }
 0x5b8   : > { %v2915_v47 = vld [vmem:[%s3611_s17] sm:$0xff]  }
 0x5b9   : > { %v1931_v50 = vpop.f32.mrf.mxu1  ;;  %v2514_v48 = vld [vmem:[%s3610_s16] ss:$0 sm:$0xff] }
 0x5ba   : > { %v1974_v52 = vpop.f32.mrf.mxu0 }
 0x5bb   : > { %v2029_v54 = vsel %vm602_vm0, %v1974_v52, 0.0  ;;  %v2772_v55 = vpop.f32.mrf.mxu1 }
 0x5bc   : > { %v2777_v56 = vpop.f32.mrf.mxu0  ;;  %v2030_v57 = vadd.f32 %v2029_v54, %v2028_v53 }
 0x5bd   : > { %v2020_v58 = vpop.f32.mrf.mxu1 }
 0x5be   : > { %v1977_v59 = vpop.f32.mrf.mxu0  ;;  %v2031_v62 = vsel %vm602_vm0, %v2020_v58, 0.0 }
 0x5bf   : > { %v2032_v1 = vadd.f32 %v2031_v62, %v2030_v57  ;;  %v2783_v2 = vpop.f32.mrf.mxu1 }
 0x5c0   : > { %v2778_v3 = vpop.f32.mrf.mxu0 }
 0x5c1   : > { %v2040_v4 = vadd.f32 %v2507_v63, %v2032_v1  ;;  %v2023_v5 = vpop.f32.mrf.mxu1 }
 0x5c3   : > { %v2784_v6 = vpop.f32.mrf.mxu1  ;;  %v3452_v7 = vadd.f32 %v2040_v4, %v3154_v0  ;;  %v2899_v0 = vld [vmem:[%s3607_s13] sm:$0xff]  }
 0x5c4   : > { %2788 = vmatpush3.bf16.msra.mxu0 %v2899_v0 }
 0x5c5   : > { %v2044_v60 = vsel %vm602_vm0, %v3452_v7, 0.0  ;;  %2813 = vmatprep.subr.bf16.mxu0 %v2998_v9 }
 0x5c6   : > { %2045 = vadd.xlane.f32.xlu0 %v2044_v60 }
 0x64f   : > { %v2046_v8 = vpop.xlane.xlu0 %2045 }
 0x650   : > { %v2047_v10 = vmul.f32 0.03125, %v2046_v8 }
 0x652   : > { %v2048_v61 = vsub.f32 %v3452_v7, %v2047_v10 }
 0x654   : > { %v2049_v11 = vmul.f32 %v2048_v61, %v2048_v61 }
 0x656   : > { %v2050_v12 = vsel %vm602_vm0, %v2049_v11, 0.0 }
 0x657   : > { %2051 = vadd.xlane.f32.xlu1 %v2050_v12 }
 0x6e0   : > { %v2052_v20 = vpop.xlane.xlu1 %2051 }
 0x6e1   : > { %v2053_v21 = vmul.f32 0.03125, %v2052_v20 }
 0x6e3   : > { %v2054_v22 = vadd.f32 1e-05, %v2053_v21 }
 0x6e5   : > { %2934 = vrsqrt.f32 %v2054_v22 }
 0x6f2   : > { %v2935_v23 = vpop.eup %2934 }
 0x6f3   : > { %v2056_v25 = vmul.f32 %v2935_v23, %v2048_v61 }
 0x6f5   : > { %v2063_v27 = vmul.f32 %v2508_v24, %v2056_v25 }
 0x6f7   : > { %v2070_v28 = vadd.f32 %v2509_v26, %v2063_v27 }
 0x6f9   : > { %v2071_v29 = vpack.c.bf16 %v2070_v28, %v2070_v28 }
 0x6fb   : > { %2790 = vmatmul.mubr.msk.bf16.vlgmr.msra.gmra.mxu0 %vm602_vm0, %v2071_v29 }
 0x6fc   : > { %2829 = vmatprep.mubr.msk.bf16.mxu0 %vm2999_vm1, %v2998_v9  ;;  %2814 = vmatpush3.bf16.msra.mxu0 %v2908_v32 }
 0x6fd   : > { %2815 = vmatprep.subr.bf16.mxu0 %v2998_v9 }
 0x700   : > { %2816 = vmatpush3.bf16.msra.mxu0 %v2909_v33 }
 0x701   : > { %2817 = vmatprep.subr.bf16.mxu0 %v2998_v9 }
 0x704   : > { %2818 = vmatpush3.bf16.msra.mxu0 %v2910_v34 }
 0x705   : > { %2819 = vmatprep.subr.bf16.mxu0 %v2998_v9 }
 0x708   : > { %2820 = vmatpush3.bf16.msra.mxu0 %v2911_v35 }
 0x709   : > { %2821 = vmatprep.subr.bf16.mxu0 %v2998_v9 }
 0x70c   : > { %2822 = vmatpush3.bf16.msra.mxu0 %v2912_v36 }
 0x70d   : > { %2823 = vmatprep.subr.bf16.mxu0 %v2998_v9 }
 0x710   : > { %2824 = vmatpush3.bf16.msra.mxu0 %v2913_v37 }
 0x711   : > { %2825 = vmatprep.subr.bf16.mxu0 %v2998_v9 }
 0x714   : > { %2826 = vmatpush3.bf16.msra.mxu0 %v2914_v46 }
 0x715   : > { %2827 = vmatprep.subr.bf16.mxu0 %v2998_v9  ;;  %v2523_v9 = vld [vmem:[%s3612_s18] ss:$0 sm:$0xff] }
 0x718   : > { %2828 = vmatpush3.bf16.msra.mxu0 %v2915_v47 }
 0x7bb   : > { %v2132_v39 = vpop.f32.mrf.mxu0 }
 0x7bc   : > { %v2133_v40 = vadd.f32 %v2510_v38, %v2132_v39 }
 0x7bd   : > { %v2791_v41 = vpop.f32.mrf.mxu0 }
 0x7be   : > { %v2138_v42 = vmax.f32 %v2133_v40, 0.0 }
 0x7bf   : > { %v2135_v43 = vpop.f32.mrf.mxu0 }
 0x7c0   : > { %v2139_v44 = vpack.c.bf16 %v2138_v42, %v2138_v42 }
 0x7c1   : > { %v2792_v45 = vpop.f32.mrf.mxu0 }
 0x7c2   : > { %2810 = vmatmul.mubr.bf16.vlgmr.msra.gmra.mxu1 %v2139_v44 }
 0x882   : > { %v2245_v49 = vpop.f32.mrf.mxu1 }
 0x883   : > { %v2246_v50 = vadd.f32 %v2514_v48, %v2245_v49 }
 0x884   : > { %v2811_v51 = vpop.f32.mrf.mxu1 }
 0x885   : > { %v2251_v52 = vmax.f32 %v2246_v50, 0.0 }
 0x886   : > { %v2248_v53 = vpop.f32.mrf.mxu1 }
 0x887   : > { %v2252_v54 = vpack.c.bf16 %v2251_v52, %v2251_v52 }
 0x888   : > { %v2812_v55 = vpop.f32.mrf.mxu1 }
 0x889   : > { %2830 = vmatmul.mubr.bf16.vlgmr.msra.gmra.mxu0 %v2252_v54 }
 0x949   : > { %v2358_v56 = vpop.f32.mrf.mxu0 }
 0x94a   : > { %v2359_v57 = vadd.f32 %v2523_v9, %v2358_v56 }
 0x94b   : > { %v2831_v58 = vpop.f32.mrf.mxu0 }
 0x94c   : > { %v2364_v59 = vadd.f32 %v2359_v57, %v3452_v7 }
 0x94d   : > { %v2361_v62 = vpop.f32.mrf.mxu0 }
 0x94e   : > { %2365 = vst.msk [vmem:[%s593_s25] sm:$0xff] %vm602_vm0, %v2364_v59 }
 0x94f   : > { %v2832_v63 = vpop.f32.mrf.mxu0 }
 0x950   : > { %2949 = shalt.err (!%p2946_p3)
}
 0x951   : > { %s2950_s25 = scalar_lea.hbm %s3552_s28, 128  ;;  %s2954_s29 = scalar_lea.hbm %s3613_s19, 256 }
 0x952   : > { %p2951_p4 = scmp.ne.s32.totalorder %s3552_s28, %s2950_s25  ;;  %p2955_p9 = scmp.lt.s32.totalorder %s3552_s28, %s3613_s19 }
 0x953   : > { %p2956_p10 = scmp.lt.s32.totalorder %s2954_s29, %s2950_s25 }
 0x954   : > { %p2952_p7 = pnand %p2951_p4, %p3139_p5 }
 0x955   : > { %p2957_p11 = por %p2956_p10, %p2955_p9 }
 0x956   : > { %p2953_p8 = pneg %p2952_p7 }
 0x958   : > { %p2958_p12 = pnand %p2957_p11, %p2953_p8 }
 0x95a   : > { %2961 = shalt.err (!%p2958_p12)
}
 0x95b   : > { %2833 = dma.vmem_to_hbm [thread:$0]  (%p3139_p5), %s3554_s24, 128, %s3552_s28, %s2367_s1  }
 0x95c PF: > { %s3637_s26 = sld [smem:[#allocation5_spill]]  ;;  %p2839_p13 = scmp.ge.s32.totalorder %s2996_s21, 2 }
 0x95e   : > { %p2836_p0 = pnand %p2839_p13, %p3143_p6 }
 0x960   : > { %p2837_p1 = pneg %p2836_p0 }
 0x962   : > { %s2392_s20 = sand.u32 1, %s3637_s26  }
 0x963   : > { %s2393_s2 = scalar_lea.sflag [#allocation3], %s2392_s20 }
 0x964   : > { %2979 = dma.done.wait (%p2837_p1), %s2393_s2, 128  }
 0x965   : > { %2981 = vsyncadd (%p2837_p1), %s2393_s2, 4294967168  ;;  %s3639_s21 = sld [smem:[#allocation7_spill]]  ;;  %s3642_s0 = smov %s2988_s30 }
 0x966   : > { %s3640_s25 = sld [smem:[#allocation6_spill]] }
 0x967   : > { %s3641_s20 = sld [smem:[#allocation8_spill]] }
 0x96b   : > { %p29_p2 = scmp.ge.s32.totalorder %s3639_s21, 4  }
 0x96c   : > { %s3643_s30 = smov %s3640_s25 }
 0x96d   :  { %31 = sbr.rel (!%p29_p2) target bundleno = 8 (0x8), region = 131 }
 0x972   :  { %2398 = vsyncpa [#allocation3], 1 }
 0x973   :  { %2400 = vsyncpa [#allocation3 + $0x1], 1 }

// kernel: tpu_custom_call.1
= control target key start
LH: loop header
LB: loop body
LE: loop exit
PB: predicated region body
PF: predicated region fallthrough
CT: control target
= control target key end

     0   :  { %s3594_s0 = inlined_call_operand.vmem [shape: f32[2,8,32], index: 0, kind: input, shape index: {}]   ;;  %s3595_s1 = inlined_call_operand.vmem [shape: f32[1,32], index: 1, kind: input, shape index: {}]   ;;  %s3596_s2 = inlined_call_operand.vmem [shape: f32[1,32], index: 2, kind: input, shape index: {}]   ;;  %s3597_s3 = inlined_call_operand.vmem [shape: bf16[4,32,8], index: 3, kind: input, shape index: {}]   ;;  %s3598_s4 = inlined_call_operand.vmem [shape: f32[4,1,8], index: 4, kind: input, shape index: {}]   ;;  %s3599_s5 = inlined_call_operand.vmem [shape: bf16[4,32,8], index: 5, kind: input, shape index: {}]   ;;  %s3600_s6 = inlined_call_operand.vmem [shape: f32[4,1,8], index: 6, kind: input, shape index: {}]   ;;  %s3601_s7 = inlined_call_operand.vmem [shape: bf16[4,32,8], index: 7, kind: input, shape index: {}]   ;;  %s3602_s8 = inlined_call_operand.vmem [shape: f32[4,1,8], index: 8, kind: input, shape index: {}]   ;;  %s3603_s9 = inlined_call_operand.vmem [shape: bf16[4,8,32], index: 9, kind: input, shape index: {}]   ;;  %s3604_s10 = inlined_call_operand.vmem [shape: f32[1,32], index: 10, kind: input, shape index: {}]   ;;  %s3605_s11 = inlined_call_operand.vmem [shape: f32[1,32], index: 11, kind: input, shape index: {}]   ;;  %s3606_s12 = inlined_call_operand.vmem [shape: f32[1,32], index: 12, kind: input, shape index: {}]   ;;  %s3607_s13 = inlined_call_operand.vmem [shape: bf16[32,128], index: 13, kind: input, shape index: {}]   ;;  %s3608_s14 = inlined_call_operand.vmem [shape: f32[1,128], index: 14, kind: input, shape index: {}]   ;;  %s3609_s15 = inlined_call_operand.vmem [shape: bf16[128,128], index: 15, kind: input, shape index: {}]   ;;  %s3610_s16 = inlined_call_operand.vmem [shape: f32[1,128], index: 16, kind: input, shape index: {}]   ;;  %s3611_s17 = inlined_call_operand.vmem [shape: bf16[128,32], index: 17, kind: input, shape index: {}]   ;;  %s3612_s18 = inlined_call_operand.vmem [shape: f32[1,32], index: 18, kind: input, shape index: {}]   ;;  %s3613_s19 = inlined_call_operand.hbm [shape: f32[2,8,32], index: 19, kind: output, shape index: {}]  }
   0x1   :  { %3621 = sst [smem:[#allocation10_spill]] %s3594_s0 }
   0x2   :  { %3622 = sst [smem:[#allocation11_spill]] %s3595_s1 }
   0x3   :  { %3623 = sst [smem:[#allocation12_spill]] %s3596_s2 }
   0x4   :  { %3624 = sst [smem:[#allocation13_spill]] %s3597_s3 }
   0x5   :  { %24 = vsyncpa [#allocation3], 0 }
   0x6   :  { %26 = vsyncpa [#allocation3 + $0x1], 0  ;;  %s3101_s0 = smov 0   ;;  %s3103_s30 = smov 0  }
   0x7   :  { %s3105_s20 = smov 0   ;;  %s3107_s21 = smov 0  }
   0x8 LB: > { %3625 = sst [smem:[#allocation5_spill]] %s2984_s0  ;;  %s3122_s1 = sadd.s32 4294967295, %s2996_s21   ;;  %s2996_s21 = sphi %s3107_s21, %s3639_s21   ;;  %s2992_s20 = sphi %s3105_s20, %s3641_s20   ;;  %s2988_s30 = sphi %s3103_s30, %s3643_s30   ;;  %s2984_s0 = sphi %s3101_s0, %s3642_s0  }
   0x9   : > { %3626 = sst [smem:[#allocation6_spill]] %s2992_s20  ;;  %s2439_s22 = sadd.s32 4294967294, %s2996_s21  }
   0xa   : > { %s3126_s2 = sadd.s32 1, %s2996_s21   ;;  %s443_s23 = sadd.s32 1, %s2992_s20 }
   0xb   : > { %3627 = sst [smem:[#allocation7_spill]] %s3126_s2  ;;  %s440_s24 = ssub.s32 %s2996_s21, %s3126_s2 }
   0xc   : > { %p453_p0 = scmp.ne.s32.totalorder %s2992_s20, %s2988_s30  ;;  %p441_p1 = scmp.eq.s32.totalorder %s440_s24, 0 }
   0xd   : > { %p454_p2 = scmp.eq.s32.totalorder %s3122_s1, 1  ;;  %p459_p3 = scmp.ne.s32.totalorder %s2988_s30, %s2984_s0 }
   0xe   : > { %p460_p4 = scmp.eq.s32.totalorder %s2439_s22, 1  ;;  %p2442_p7 = scmp.ge.s32.totalorder %s2996_s21, 1 }
   0xf   : > { %s3137_s25 = scalar_select %p441_p1, %s2992_s20, %s443_s23  }
  0x10   : > { %p3139_p5 = por %p454_p2, %p453_p0  ;;  %p3143_p6 = por %p460_p4, %p459_p3 }
  0x11   : > { %3628 = sst [smem:[#allocation8_spill]] %s3137_s25  ;;  %p539_p8 = scmp.lt.s32.totalorder %s2996_s21, 3 }
  0x12   : > { %s3630_s26 = scalar_select %p3143_p6, 1, 0 }
  0x13   : > { %p540_p9 = pnand %p2442_p7, %p539_p8 }
  0x14   : > { %3631 = sst [smem:[#allocation9_spill]] %s3630_s26  ;;  %p594_p10 = scmp.lt.s32.totalorder (!%p540_p9), %s3122_s1, 1 }
  0x15   : > { %543 = sbr.rel (%p540_p9) target bundleno = 2396 (0x95c), region = 96  ;;  %s3632_s23 = sld [smem:[#allocation10_spill]] (!%p540_p9) }
  0x16   : > { %s3633_s20 = sld [smem:[#allocation13_spill]] (!%p540_p9)  ;;  %s591_s0 = sand.u32 (!%p540_p9), 1, %s2988_s30  }
  0x17   : > { %s3635_s29 = sld [smem:[#allocation11_spill]] (!%p540_p9)  ;;  %s2443_s26 = sshll.u32 (!%p540_p9), %s591_s0, 3 }
  0x18   : > { %s593_s25 = scalar_lea.vmem (!%p540_p9), [#allocation2], %s2443_s26  ;;  %s3000_s22 = smov (!%p540_p9), [#allocation2]  }
  0x1a   : > { %s595_s27 = scalar_select %p594_p10, %s3122_s1, 1  ;;  %vm602_vm0 = vcmask 261120   ;;  %v2998_v9 = vmov 0.0   ;;  %vm2999_vm1 = vmmov 0   ;;  %v2882_v26 = vld [vmem:[%s3599_s5 + $0x8] sm:$0xff]   ;;  %v2883_v27 = vld [vmem:[%s3599_s5 + $0x18] sm:$0xff]  }
  0x1b   : > { %2617 = vmatprep.subr.bf16.mxu0 %v2998_v9  ;;  %2625 = vmatprep.subr.bf16.mxu1 %v2998_v9  ;;  %v2884_v28 = vld [vmem:[%s3599_s5] sm:$0xff]   ;;  %v2885_v29 = vld [vmem:[%s3599_s5 + $0x10] sm:$0xff]   ;;  %v2886_v30 = vld [vmem:[%s3599_s5 + $0x28] sm:$0xff]   ;;  %vm1403_vm2 = vcmask 64512   ;;  %vm1652_vm3 = vcmask 1043456  }
  0x1c   : > { %s2444_s28 = sshll.u32 %s595_s27, 3  ;;  %s3634_s2 = smov %s3633_s20  ;;  %v2874_v7 = vld [vmem:[%s3633_s20 + $0x8] sm:$0xff]   ;;  %2621 = vmatprep.mubr.msk.bf16.mxu0 %vm2999_vm1, %v2998_v9  ;;  %2629 = vmatprep.mubr.msk.bf16.mxu1 %vm2999_vm1, %v2998_v9  ;;  %v2887_v31 = vld [vmem:[%s3599_s5 + $0x38] sm:$0xff]   ;;  %v2888_v32 = vld [vmem:[%s3599_s5 + $0x20] sm:$0xff]  }
  0x1d   : > { %s597_s24 = scalar_lea.vmem %s3632_s23, %s2444_s28  ;;  %v2875_v8 = vld [vmem:[%s3634_s2 + $0x18] sm:$0xff]   ;;  %2618 = vmatpush3.bf16.msra.mxu0 %v2874_v7  ;;  %v2876_v10 = vld [vmem:[%s3634_s2] sm:$0xff]   ;;  %v2877_v11 = vld [vmem:[%s3634_s2 + $0x10] sm:$0xff]   ;;  %s3636_s23 = sld [smem:[#allocation12_spill]] }
  0x1e   : > { %v3154_v0 = vld [vmem:[%s597_s24] sm:$0xff]  ;;  %2626 = vmatpush3.bf16.msra.mxu1 %v2875_v8  ;;  %2619 = vmatprep.subr.bf16.mxu0 %v2998_v9  ;;  %v2878_v21 = vld [vmem:[%s3634_s2 + $0x28] sm:$0xff]   ;;  %v2879_v22 = vld [vmem:[%s3634_s2 + $0x38] sm:$0xff]   ;;  %s2533_s20 = sshll.u32 %s3122_s1, 7  ;;  %s2380_s24 = sshll.u32 %s593_s25, 4  ;;  %s3554_s24 = int_to_ptr.vmem [resolvable:$true] %s2380_s24 }
  0x1f   : > { %v603_v1 = vsel %vm602_vm0, %v3154_v0, 0.0  ;;  %2627 = vmatprep.subr.bf16.mxu1 %v2998_v9  ;;  %v2445_v16 = vld [vmem:[%s3635_s29] ss:$0 sm:$0xff]  ;;  %v2881_v25 = vld [vmem:[%s3634_s2 + $0x30] sm:$0xff]   ;;  %v2890_v34 = vld [vmem:[%s3601_s7 + $0x8] sm:$0xff]   ;;  %s3552_s28 = scalar_lea.hbm %s3613_s19, %s2533_s20  ;;  %s2367_s1 = scalar_lea.sflag [#allocation3], %s591_s0 }
  0x20   : > { %604 = vadd.xlane.f32.xlu0 %v603_v1  ;;  %v2880_v24 = vld [vmem:[%s3634_s2 + $0x20] sm:$0xff]   ;;  %v2889_v33 = vld [vmem:[%s3599_s5 + $0x30] sm:$0xff]   ;;  %v2891_v35 = vld [vmem:[%s3601_s7 + $0x18] sm:$0xff]   ;;  %s2936_s26 = scalar_lea.vmem %s3554_s24, 128 }
  0x21   : > { %2620 = vmatpush3.bf16.msra.mxu0 %v2876_v10  ;;  %v2892_v36 = vld [vmem:[%s3601_s7] sm:$0xff]   ;;  %v2893_v37 = vld [vmem:[%s3601_s7 + $0x10] sm:$0xff]   ;;  %v2894_v38 = vld [vmem:[%s3601_s7 + $0x28] sm:$0xff]   ;;  %p2937_p11 = scmp.ne.s32.totalorder %s3554_s24, %s2936_s26 }
  0x22   : > { %2628 = vmatpush3.bf16.msra.mxu1 %v2877_v11  ;;  %2633 = vmatprep.subr.bf16.mxu0 %v2998_v9  ;;  %v2895_v39 = vld [vmem:[%s3601_s7 + $0x38] sm:$0xff]   ;;  %v2896_v40 = vld [vmem:[%s3601_s7 + $0x20] sm:$0xff]   ;;  %v2897_v41 = vld [vmem:[%s3601_s7 + $0x30] sm:$0xff]  }
  0x23   : > { %2641 = vmatprep.subr.bf16.mxu1 %v2998_v9  ;;  %v2446_v18 = vld [vmem:[%s3636_s23] ss:$0 sm:$0xff]  ;;  %v2464_v59 = vld [vmem:[%s3600_s6 + $0x1] ss:$0 sm:$0xff]  ;;  %p2938_p12 = pnand %p2937_p11, %p3139_p5  ;;  %s2940_s23 = sshll.u32 %s3000_s22, 4  ;;  %s2941_s23 = int_to_ptr.vmem [resolvable:$false] %s2940_s23 }
  0x24   : > { %v2463_v58 = vld [vmem:[%s3600_s6] ss:$0 sm:$0xff]  ;;  %v2448_v61 = vld [vmem:[%s3598_s4 + $0x1] ss:$0 sm:$0xff]  ;;  %s2942_s20 = scalar_lea.vmem %s2941_s23, 256  ;;  %p2943_p0 = scmp.lt.s32.totalorder %s3554_s24, %s2941_s23 }
  0x25   : > { %v2447_v60 = vld [vmem:[%s3598_s4] ss:$0 sm:$0xff]  ;;  %p2939_p13 = pneg %p2938_p12  ;;  %p2944_p1 = scmp.lt.s32.totalorder %s2942_s20, %s2936_s26 }
  0x27   : > { %p2945_p2 = por %p2944_p1, %p2943_p0 }
  0x29   : > { %p2946_p3 = pnand %p2945_p2, %p2939_p13 }
  0xa9   : > { %v605_v2 = vpop.xlane.xlu0 %604 }
  0xaa   : > { %v607_v3 = vmul.f32 0.03125, %v605_v2 }
  0xac   : > { %v608_v4 = vsub.f32 %v3154_v0, %v607_v3 }
  0xae   : > { %v609_v5 = vmul.f32 %v608_v4, %v608_v4 }
  0xb0   : > { %v610_v6 = vsel %vm602_vm0, %v609_v5, 0.0 }
  0xb1   : > { %611 = vadd.xlane.f32.xlu0 %v610_v6 }
 0x13a   : > { %v612_v12 = vpop.xlane.xlu0 %611 }
 0x13b   : > { %v613_v13 = vmul.f32 0.03125, %v612_v12 }
 0x13d   : > { %v614_v14 = vadd.f32 1e-05, %v613_v13 }
 0x13f   : > { %2916 = vrsqrt.f32 %v614_v14  ;;  %v2465_v14 = vld [vmem:[%s3600_s6 + $0x2] ss:$0 sm:$0xff] }
 0x14c   : > { %v2917_v15 = vpop.eup %2916 }
 0x14d   : > { %v616_v17 = vmul.f32 %v2917_v15, %v608_v4 }
 0x14f   : > { %v623_v19 = vmul.f32 %v2445_v16, %v616_v17 }
 0x151   : > { %v630_v20 = vadd.f32 %v2446_v18, %v623_v19  ;;  %v2466_v19 = vld [vmem:[%s3600_s6 + $0x3] ss:$0 sm:$0xff] }
 0x153   : > { %v3194_v23 = vpack.c.bf16 %v630_v20, %v630_v20  ;;  %v2449_v20 = vld [vmem:[%s3598_s4 + $0x2] ss:$0 sm:$0xff] }
 0x155   : > { %2622 = vmatmul.mubr.msk.bf16.vlgmr.msra.gmra.mxu0 %vm602_vm0, %v3194_v23  ;;  %2630 = vmatmul.mubr.msk.bf16.vlgmr.msra.gmra.mxu1 %vm602_vm0, %v3194_v23 }
 0x156   : > { %2634 = vmatpush3.bf16.msra.mxu0 %v2878_v21  ;;  %2642 = vmatpush3.bf16.msra.mxu1 %v2879_v22  ;;  %v2450_v21 = vld [vmem:[%s3598_s4 + $0x3] ss:$0 sm:$0xff] }
 0x157   : > { %2635 = vmatprep.subr.bf16.mxu0 %v2998_v9  ;;  %2643 = vmatprep.subr.bf16.mxu1 %v2998_v9 }
 0x158   : > { %2637 = vmatprep.mubr.msk.bf16.mxu0 %vm2999_vm1, %v2998_v9  ;;  %2645 = vmatprep.mubr.msk.bf16.mxu1 %vm2999_vm1, %v2998_v9 }
 0x15a   : > { %2636 = vmatpush3.bf16.msra.mxu0 %v2880_v24  ;;  %2644 = vmatpush3.bf16.msra.mxu1 %v2881_v25 }
 0x15b   : > { %2649 = vmatprep.subr.bf16.mxu0 %v2998_v9  ;;  %2657 = vmatprep.subr.bf16.mxu1 %v2998_v9 }
 0x15d   : > { %2638 = vmatmul.mubr.msk.bf16.vlgmr.msra.gmra.mxu0 %vm602_vm0, %v3194_v23  ;;  %2646 = vmatmul.mubr.msk.bf16.vlgmr.msra.gmra.mxu1 %vm602_vm0, %v3194_v23 }
 0x15e   : > { %2650 = vmatpush3.bf16.msra.mxu0 %v2882_v26  ;;  %2658 = vmatpush3.bf16.msra.mxu1 %v2883_v27 }
 0x15f   : > { %2651 = vmatprep.subr.bf16.mxu0 %v2998_v9  ;;  %2659 = vmatprep.subr.bf16.mxu1 %v2998_v9 }
 0x160   : > { %2653 = vmatprep.mubr.msk.bf16.mxu0 %vm2999_vm1, %v2998_v9  ;;  %2661 = vmatprep.mubr.msk.bf16.mxu1 %vm2999_vm1, %v2998_v9 }
 0x162   : > { %2652 = vmatpush3.bf16.msra.mxu0 %v2884_v28  ;;  %2660 = vmatpush3.bf16.msra.mxu1 %v2885_v29 }
 0x163   : > { %2665 = vmatprep.subr.bf16.mxu0 %v2998_v9  ;;  %2673 = vmatprep.subr.bf16.mxu1 %v2998_v9 }
 0x165   : > { %2654 = vmatmul.mubr.msk.bf16.vlgmr.msra.gmra.mxu0 %vm602_vm0, %v3194_v23  ;;  %2662 = vmatmul.mubr.msk.bf16.vlgmr.msra.gmra.mxu1 %vm602_vm0, %v3194_v23 }
 0x166   : > { %2666 = vmatpush3.bf16.msra.mxu0 %v2886_v30  ;;  %2674 = vmatpush3.bf16.msra.mxu1 %v2887_v31 }
 0x167   : > { %2667 = vmatprep.subr.bf16.mxu0 %v2998_v9  ;;  %2675 = vmatprep.subr.bf16.mxu1 %v2998_v9 }
 0x168   : > { %2669 = vmatprep.mubr.msk.bf16.mxu0 %vm2999_vm1, %v2998_v9  ;;  %2677 = vmatprep.mubr.msk.bf16.mxu1 %vm2999_vm1, %v2998_v9 }
 0x16a   : > { %2668 = vmatpush3.bf16.msra.mxu0 %v2888_v32  ;;  %2676 = vmatpush3.bf16.msra.mxu1 %v2889_v33 }
 0x16b   : > { %2681 = vmatprep.subr.bf16.mxu0 %v2998_v9  ;;  %2689 = vmatprep.subr.bf16.mxu1 %v2998_v9 }
 0x16d   : > { %2670 = vmatmul.mubr.msk.bf16.vlgmr.msra.gmra.mxu0 %vm602_vm0, %v3194_v23  ;;  %2678 = vmatmul.mubr.msk.bf16.vlgmr.msra.gmra.mxu1 %vm602_vm0, %v3194_v23 }
 0x16e   : > { %2682 = vmatpush3.bf16.msra.mxu0 %v2890_v34  ;;  %2690 = vmatpush3.bf16.msra.mxu1 %v2891_v35 }
 0x16f   : > { %2683 = vmatprep.subr.bf16.mxu0 %v2998_v9  ;;  %2691 = vmatprep.subr.bf16.mxu1 %v2998_v9 }
 0x170   : > { %2685 = vmatprep.mubr.msk.bf16.mxu0 %vm2999_vm1, %v2998_v9  ;;  %2693 = vmatprep.mubr.msk.bf16.mxu1 %vm2999_vm1, %v2998_v9 }
 0x172   : > { %2684 = vmatpush3.bf16.msra.mxu0 %v2892_v36  ;;  %2692 = vmatpush3.bf16.msra.mxu1 %v2893_v37 }
 0x173   : > { %2697 = vmatprep.subr.bf16.mxu0 %v2998_v9  ;;  %2705 = vmatprep.subr.bf16.mxu1 %v2998_v9 }
 0x175   : > { %2686 = vmatmul.mubr.msk.bf16.vlgmr.msra.gmra.mxu0 %vm602_vm0, %v3194_v23  ;;  %2694 = vmatmul.mubr.msk.bf16.vlgmr.msra.gmra.mxu1 %vm602_vm0, %v3194_v23 }
 0x176   : > { %2698 = vmatpush3.bf16.msra.mxu0 %v2894_v38  ;;  %2706 = vmatpush3.bf16.msra.mxu1 %v2895_v39 }
 0x177   : > { %2699 = vmatprep.subr.bf16.mxu0 %v2998_v9  ;;  %2707 = vmatprep.subr.bf16.mxu1 %v2998_v9 }
 0x178   : > { %2701 = vmatprep.mubr.msk.bf16.mxu0 %vm2999_vm1, %v2998_v9  ;;  %2709 = vmatprep.mubr.msk.bf16.mxu1 %vm2999_vm1, %v2998_v9 }
 0x17a   : > { %2700 = vmatpush3.bf16.msra.mxu0 %v2896_v40  ;;  %2708 = vmatpush3.bf16.msra.mxu1 %v2897_v41  ;;  %v2479_v40 = vld [vmem:[%s3602_s8] ss:$0 sm:$0xff]  ;;  %v2480_v41 = vld [vmem:[%s3602_s8 + $0x1] ss:$0 sm:$0xff] }
 0x17b   : > { %2713 = vmatprep.subr.bf16.mxu0 %v2998_v9  ;;  %2719 = vmatprep.subr.bf16.mxu1 %v2998_v9 }
 0x17d   : > { %2702 = vmatmul.mubr.msk.bf16.vlgmr.msra.gmra.mxu0 %vm602_vm0, %v3194_v23  ;;  %2710 = vmatmul.mubr.msk.bf16.vlgmr.msra.gmra.mxu1 %vm602_vm0, %v3194_v23 }
 0x17e   : > { %2715 = vmatprep.mubr.msk.bf16.mxu0 %vm2999_vm1, %v2998_v9  ;;  %2721 = vmatprep.mubr.msk.bf16.mxu1 %vm2999_vm1, %v2998_v9 }
 0x215   : > { %v725_v42 = vpop.f32.mrf.mxu0  ;;  %v777_v43 = vpop.f32.mrf.mxu1 }
 0x216   : > { %v726_v3 = vadd.f32 %v2447_v60, %v725_v42  ;;  %v778_v4 = vadd.f32 %v2448_v61, %v777_v43 }
 0x217   : > { %v2623_v44 = vpop.f32.mrf.mxu0  ;;  %v2631_v45 = vpop.f32.mrf.mxu1 }
 0x218   : > { %v1391_v15 = vmul.f32 0.35355338, %v726_v3  ;;  %v1392_v16 = vmul.f32 0.35355338, %v778_v4 }
 0x219   : > { %v728_v46 = vpop.f32.mrf.mxu0  ;;  %v780_v47 = vpop.f32.mrf.mxu1 }
 0x21a   : > { %v1395_v26 = vpack.c.bf16 %v1391_v15, %v1391_v15  ;;  %v1396_v27 = vpack.c.bf16 %v1392_v16, %v1392_v16 }
 0x21b   : > { %v2624_v48 = vpop.f32.mrf.mxu0  ;;  %v2632_v49 = vpop.f32.mrf.mxu1 }
 0x21d   : > { %v829_v50 = vpop.f32.mrf.mxu0  ;;  %v881_v51 = vpop.f32.mrf.mxu1 }
 0x21e   : > { %v830_v30 = vadd.f32 %v2449_v20, %v829_v50  ;;  %v882_v31 = vadd.f32 %v2450_v21, %v881_v51 }
 0x21f   : > { %v2639_v52 = vpop.f32.mrf.mxu0  ;;  %v2647_v53 = vpop.f32.mrf.mxu1 }
 0x220   : > { %v1393_v42 = vmul.f32 0.35355338, %v830_v30  ;;  %v1394_v43 = vmul.f32 0.35355338, %v882_v31 }
 0x221   : > { %v832_v54 = vpop.f32.mrf.mxu0  ;;  %v884_v55 = vpop.f32.mrf.mxu1 }
 0x222   : > { %v1397_v50 = vpack.c.bf16 %v1393_v42, %v1393_v42  ;;  %v1398_v51 = vpack.c.bf16 %v1394_v43, %v1394_v43 }
 0x223   : > { %v2640_v56 = vpop.f32.mrf.mxu0  ;;  %v2648_v57 = vpop.f32.mrf.mxu1 }
 0x225   : > { %v977_v62 = vpop.f32.mrf.mxu0  ;;  %v1029_v63 = vpop.f32.mrf.mxu1 }
 0x226   : > { %v978_v1 = vadd.f32 %v2463_v58, %v977_v62  ;;  %v1030_v2 = vadd.f32 %v2464_v59, %v1029_v63 }
 0x227   : > { %v2655_v5 = vpop.f32.mrf.mxu0  ;;  %v2663_v6 = vpop.f32.mrf.mxu1 }
 0x228   : > { %v1399_v7 = vpack.c.bf16 %v978_v1, %v978_v1  ;;  %v1400_v8 = vpack.c.bf16 %v1030_v2, %v1030_v2  ;;  %v1588_v5 = vlaneseq }
 0x229   : > { %v980_v10 = vpop.f32.mrf.mxu0  ;;  %v1032_v11 = vpop.f32.mrf.mxu1 }
 0x22a   : > { %v1408_v12 = vsel %vm1403_vm2, %v1399_v7, 0  ;;  %v1454_v13 = vsel %vm1403_vm2, %v1400_v8, 0  ;;  %v1589_v6 = vshrl.u32 %v1588_v5, 7  ;;  %v1591_v7 = vand.u32 127, %v1588_v5 }
 0x22b   : > { %v2656_v17 = vpop.f32.mrf.mxu0  ;;  %v2664_v18 = vpop.f32.mrf.mxu1  ;;  %2714 = vmatpush3.bf16.xpose.msra.mxu0 %v1408_v12  ;;  %2720 = vmatpush3.bf16.xpose.msra.mxu1 %v1454_v13 }
 0x22c   : > { %2725 = vmatprep.subr.bf16.mxu0 %v2998_v9  ;;  %2731 = vmatprep.subr.bf16.mxu1 %v2998_v9  ;;  %vm1592_vm4 = vcmp.le.s32.totalorder %v1591_v7, %v1589_v6 }
 0x22d   : > { %v1081_v22 = vpop.f32.mrf.mxu0  ;;  %v1133_v23 = vpop.f32.mrf.mxu1 }
 0x22e   : > { %v1082_v24 = vadd.f32 %v2465_v14, %v1081_v22  ;;  %v1134_v25 = vadd.f32 %v2466_v19, %v1133_v23 }
 0x22f   : > { %v2671_v28 = vpop.f32.mrf.mxu0  ;;  %v2679_v29 = vpop.f32.mrf.mxu1 }
 0x230   : > { %v1401_v32 = vpack.c.bf16 %v1082_v24, %v1082_v24  ;;  %v1402_v33 = vpack.c.bf16 %v1134_v25, %v1134_v25 }
 0x231   : > { %v1084_v34 = vpop.f32.mrf.mxu0  ;;  %v1136_v35 = vpop.f32.mrf.mxu1 }
 0x232   : > { %v1500_v36 = vsel %vm1403_vm2, %v1401_v32, 0  ;;  %v1546_v37 = vsel %vm1403_vm2, %v1402_v33, 0  ;;  %2716 = vmatmul.mubr.msk.bf16.vlgmr.msra.gmra.mxu0 %vm1403_vm2, %v1395_v26  ;;  %2722 = vmatmul.mubr.msk.bf16.vlgmr.msra.gmra.mxu1 %vm1403_vm2, %v1396_v27 }
 0x233   : > { %v2672_v38 = vpop.f32.mrf.mxu0  ;;  %v2680_v39 = vpop.f32.mrf.mxu1  ;;  %2726 = vmatpush3.bf16.xpose.msra.mxu0 %v1500_v36  ;;  %2732 = vmatpush3.bf16.xpose.msra.mxu1 %v1546_v37 }
 0x234   : > { %2727 = vmatprep.mubr.msk.bf16.mxu0 %vm2999_vm1, %v2998_v9  ;;  %2733 = vmatprep.mubr.msk.bf16.mxu1 %vm2999_vm1, %v2998_v9 }
 0x235   : > { %v1229_v44 = vpop.f32.mrf.mxu0  ;;  %v1281_v45 = vpop.f32.mrf.mxu1  ;;  %2737 = vmatprep.subr.bf16.mxu0 %v2998_v9  ;;  %2743 = vmatprep.subr.bf16.mxu1 %v2998_v9 }
 0x236   : > { %v1230_v46 = vadd.f32 %v2479_v40, %v1229_v44  ;;  %v1282_v47 = vadd.f32 %v2480_v41, %v1281_v45 }
 0x237   : > { %v2687_v48 = vpop.f32.mrf.mxu0  ;;  %v2695_v49 = vpop.f32.mrf.mxu1 }
 0x238   : > { %v1645_v52 = vpack.c.bf16 %v1230_v46, %v1230_v46  ;;  %v1646_v53 = vpack.c.bf16 %v1282_v47, %v1282_v47 }
 0x239   : > { %v1232_v54 = vpop.f32.mrf.mxu0  ;;  %v1284_v55 = vpop.f32.mrf.mxu1 }
 0x23a   : > { %v1654_v56 = vsel %vm1652_vm3, %v1645_v52, 0  ;;  %v1700_v57 = vsel %vm1652_vm3, %v1646_v53, 0  ;;  %2728 = vmatmul.mubr.msk.bf16.vlgmr.msra.gmra.mxu0 %vm1403_vm2, %v1397_v50  ;;  %2734 = vmatmul.mubr.msk.bf16.vlgmr.msra.gmra.mxu1 %vm1403_vm2, %v1398_v51  ;;  %v2481_v55 = vld [vmem:[%s3602_s8 + $0x2] ss:$0 sm:$0xff] }
 0x23b   : > { %v2688_v58 = vpop.f32.mrf.mxu0  ;;  %v2696_v59 = vpop.f32.mrf.mxu1  ;;  %2738 = vmatpush3.bf16.msra.mxu0 %v1654_v56  ;;  %2744 = vmatpush3.bf16.msra.mxu1 %v1700_v57 }
 0x23c   : > { %2739 = vmatprep.mubr.msk.bf16.mxu0 %vm2999_vm1, %v2998_v9  ;;  %2749 = vmatprep.subr.bf16.mxu0 %v2998_v9  ;;  %v2482_v59 = vld [vmem:[%s3602_s8 + $0x3] ss:$0 sm:$0xff] }
 0x23d   : > { %v3369_v60 = vpop.f32.mrf.mxu0  ;;  %v3371_v61 = vpop.f32.mrf.mxu1  ;;  %2745 = vmatprep.mubr.msk.bf16.mxu1 %vm2999_vm1, %v2998_v9  ;;  %2755 = vmatprep.subr.bf16.mxu1 %v2998_v9 }
 0x23e   : > { %v1334_v58 = vadd.f32 %v2481_v55, %v3369_v60 }
 0x23f   : > { %v2703_v62 = vpop.f32.mrf.mxu0  ;;  %v2711_v63 = vpop.f32.mrf.mxu1 }
 0x240   : > { %v1647_v63 = vpack.c.bf16 %v1334_v58, %v1334_v58 }
 0x241   : > { %v1336_v1 = vpop.f32.mrf.mxu0  ;;  %v1388_v2 = vpop.f32.mrf.mxu1 }
 0x242   : > { %v1386_v1 = vadd.f32 %v2482_v59, %v3371_v61  ;;  %v1746_v5 = vsel %vm1652_vm3, %v1647_v63, 0  ;;  %v2507_v63 = vld [vmem:[%s3604_s10] ss:$0 sm:$0xff] }
 0x243   : > { %v2704_v3 = vpop.f32.mrf.mxu0  ;;  %v2712_v4 = vpop.f32.mrf.mxu1 }
 0x244   : > { %v1648_v6 = vpack.c.bf16 %v1386_v1, %v1386_v1 }
 0x246   : > { %v1792_v61 = vsel %vm1652_vm3, %v1648_v6, 0 }
 0x2f2   : > { %v1444_v8 = vpop.f32.mrf.mxu0  ;;  %v1490_v10 = vpop.f32.mrf.mxu1 }
 0x2f3   : > { %v1593_v11 = vsel %vm1592_vm4, %v1444_v8, -1e+30  ;;  %v1594_v15 = vsel %vm1592_vm4, %v1490_v10, -1e+30 }
 0x2f4   : > { %v2717_v12 = vpop.f32.mrf.mxu0  ;;  %v2723_v13 = vpop.f32.mrf.mxu1  ;;  %v1597_v14 = vsel %vm1403_vm2, %v1593_v11, -inf  ;;  %v1600_v20 = vsel %vm1403_vm2, %v1594_v15, -inf }
 0x2f5   : > { %1598 = vmax.xlane.f32.xlu1 %v1597_v14 }
 0x2f6   : > { %v1447_v16 = vpop.f32.mrf.mxu0  ;;  %v1493_v17 = vpop.f32.mrf.mxu1 }
 0x2f7   : > { %v1839_v17 = vld [vmem:[%s3603_s9 + $0x4] sm:$0xf] }
 0x2f8   : > { %v2718_v18 = vpop.f32.mrf.mxu0  ;;  %v2724_v19 = vpop.f32.mrf.mxu1 }
 0x2f9   : > { %1601 = vmax.xlane.f32.xlu1 %v1600_v20  ;;  %v1892_v18 = vsel %vm1652_vm3, %v1839_v17, 0  ;;  %v1840_v19 = vld [vmem:[%s3603_s9 + $0x8] sm:$0xf]  ;;  %v2903_v17 = vld [vmem:[%s3609_s15 + $0x20] sm:$0xff]  }
 0x2fa   : > { %v1536_v21 = vpop.f32.mrf.mxu0  ;;  %v1582_v22 = vpop.f32.mrf.mxu1 }
 0x2fb   : > { %v1595_v23 = vsel %vm1592_vm4, %v1536_v21, -1e+30  ;;  %v1596_v24 = vsel %vm1592_vm4, %v1582_v22, -1e+30  ;;  %v1938_v22 = vsel %vm1652_vm3, %v1840_v19, 0  ;;  %v2905_v19 = vld [vmem:[%s3609_s15 + $0x10] sm:$0xff]  }
 0x2fc   : > { %v2729_v25 = vpop.f32.mrf.mxu0  ;;  %v2735_v26 = vpop.f32.mrf.mxu1  ;;  %v1606_v27 = vsel %vm1403_vm2, %v1596_v24, -inf  ;;  %v1603_v28 = vsel %vm1403_vm2, %v1595_v23, -inf }
 0x2fd   : > { %1607 = vmax.xlane.f32.xlu1 %v1606_v27  ;;  %1604 = vmax.xlane.f32.xlu0 %v1603_v28 }
 0x2fe   : > { %v1539_v29 = vpop.f32.mrf.mxu0  ;;  %v1585_v30 = vpop.f32.mrf.mxu1 }
 0x300   : > { %v2730_v31 = vpop.f32.mrf.mxu0  ;;  %v2736_v32 = vpop.f32.mrf.mxu1 }
 0x37e   : > { %v1599_v33 = vpop.xlane.xlu1 %1598 }
 0x37f   : > { %v1609_v34 = vsub.f32 %v1593_v11, %v1599_v33  ;;  %v1838_v11 = vld [vmem:[%s3603_s9] sm:$0xf] }
 0x381   : > { %v1613_v35 = vmul.f32 1.442695, %v1609_v34 }
 0x382   : > { %v1602_v36 = vpop.xlane.xlu1 %1601 }
 0x383   : > { %2918 = vpow2.f32 %v1613_v35  ;;  %v1610_v37 = vsub.f32 %v1594_v15, %v1602_v36  ;;  %v1846_v15 = vsel %vm1652_vm3, %v1838_v11, 0 }
 0x385   : > { %v1615_v38 = vmul.f32 1.442695, %v1610_v37 }
 0x386   : > { %v1608_v39 = vpop.xlane.xlu1 %1607  ;;  %v1605_v40 = vpop.xlane.xlu0 %1604 }
 0x387   : > { %2920 = vpow2.f32 %v1615_v38  ;;  %v1612_v41 = vsub.f32 %v1596_v24, %v1608_v39  ;;  %v1611_v42 = vsub.f32 %v1595_v23, %v1605_v40  ;;  %v1841_v24 = vld [vmem:[%s3603_s9 + $0xc] sm:$0xf] }
 0x388   : > { %v1984_v28 = vsel %vm1652_vm3, %v1841_v24, 0  ;;  %v2508_v24 = vld [vmem:[%s3605_s11] ss:$0 sm:$0xff] }
 0x389   : > { %v1619_v43 = vmul.f32 1.442695, %v1612_v41  ;;  %v1617_v44 = vmul.f32 1.442695, %v1611_v42 }
 0x38b   : > { %2922 = vpow2.f32 %v1619_v43 }
 0x38c   : > { %2924 = vpow2.f32 %v1617_v44 }
 0x390   : > { %v2919_v45 = vpop.eup %2918 }
 0x391   : > { %v1621_v46 = vsel %vm1403_vm2, %v2919_v45, 0.0 }
 0x392   : > { %1622 = vadd.xlane.f32.xlu0 %v1621_v46 }
 0x394   : > { %v2921_v47 = vpop.eup %2920 }
 0x395   : > { %v1624_v48 = vsel %vm1403_vm2, %v2921_v47, 0.0 }
 0x396   : > { %1625 = vadd.xlane.f32.xlu1 %v1624_v48 }
 0x398   : > { %v2923_v49 = vpop.eup %2922 }
 0x399   : > { %v2925_v50 = vpop.eup %2924  ;;  %v1630_v51 = vsel %vm1403_vm2, %v2923_v49, 0.0 }
 0x39a   : > { %1631 = vadd.xlane.f32.xlu1 %v1630_v51  ;;  %v1627_v52 = vsel %vm1403_vm2, %v2925_v50, 0.0 }
 0x39b   : > { %1628 = vadd.xlane.f32.xlu0 %v1627_v52 }
 0x41b   : > { %v1623_v53 = vpop.xlane.xlu0 %1622 }
 0x41c   : > { %2926 = vrcp.f32 %v1623_v53 }
 0x41f   : > { %v1626_v54 = vpop.xlane.xlu1 %1625 }
 0x420   : > { %2928 = vrcp.f32 %v1626_v54 }
 0x423   : > { %v1632_v56 = vpop.xlane.xlu1 %1631 }
 0x424   : > { %2930 = vrcp.f32 %v1632_v56  ;;  %v1629_v57 = vpop.xlane.xlu0 %1628 }
 0x425   : > { %2932 = vrcp.f32 %v1629_v57 }
 0x429   : > { %v2927_v62 = vpop.eup %2926 }
 0x42a   : > { %v1637_v2 = vmul.f32 %v2927_v62, %v2919_v45 }
 0x42c   : > { %v1641_v3 = vpack.c.bf16 %v1637_v2, %v1637_v2 }
 0x42d   : > { %v2929_v4 = vpop.eup %2928 }
 0x42e   : > { %2740 = vmatmul.mubr.msk.bf16.vlgmr.msra.gmra.mxu0 %vm1403_vm2, %v1641_v3  ;;  %v1638_v7 = vmul.f32 %v2929_v4, %v2921_v47 }
 0x42f   : > { %2750 = vmatpush3.bf16.msra.mxu0 %v1746_v5  ;;  %2751 = vmatprep.mubr.msk.bf16.mxu0 %vm2999_vm1, %v2998_v9 }
 0x430   : > { %v1642_v60 = vpack.c.bf16 %v1638_v7, %v1638_v7  ;;  %2761 = vmatprep.subr.bf16.mxu0 %v2998_v9 }
 0x431   : > { %v2931_v8 = vpop.eup %2930 }
 0x432   : > { %v2933_v10 = vpop.eup %2932  ;;  %2746 = vmatmul.mubr.msk.bf16.vlgmr.msra.gmra.mxu1 %vm1403_vm2, %v1642_v60  ;;  %v1640_v13 = vmul.f32 %v2931_v8, %v2923_v49 }
 0x433   : > { %2756 = vmatpush3.bf16.msra.mxu1 %v1792_v61  ;;  %v1639_v12 = vmul.f32 %v2933_v10, %v2925_v50  ;;  %2757 = vmatprep.mubr.msk.bf16.mxu1 %vm2999_vm1, %v2998_v9 }
 0x434   : > { %2767 = vmatprep.subr.bf16.mxu1 %v2998_v9  ;;  %v1644_v16 = vpack.c.bf16 %v1640_v13, %v1640_v13  ;;  %v2898_v13 = vld [vmem:[%s3607_s13 + $0x8] sm:$0xff]  }
 0x435   : > { %v1643_v14 = vpack.c.bf16 %v1639_v12, %v1639_v12 }
 0x437   : > { %2752 = vmatmul.mubr.msk.bf16.vlgmr.msra.gmra.mxu0 %vm1403_vm2, %v1643_v14  ;;  %v2900_v14 = vld [vmem:[%s3609_s15 + $0x38] sm:$0xff]  }
 0x438   : > { %2762 = vmatpush3.bf16.msra.mxu0 %v1846_v15  ;;  %2763 = vmatprep.mubr.msk.bf16.mxu0 %vm2999_vm1, %v2998_v9  ;;  %v2901_v15 = vld [vmem:[%s3609_s15 + $0x30] sm:$0xff]  }
 0x439   : > { %2773 = vmatprep.subr.bf16.mxu0 %v2998_v9 }
 0x43a   : > { %2758 = vmatmul.mubr.msk.bf16.vlgmr.msra.gmra.mxu1 %vm1403_vm2, %v1644_v16  ;;  %v2902_v16 = vld [vmem:[%s3609_s15 + $0x28] sm:$0xff]  }
 0x43b   : > { %2769 = vmatprep.mubr.msk.bf16.mxu1 %vm2999_vm1, %v2998_v9  ;;  %2768 = vmatpush3.bf16.msra.mxu1 %v1892_v18  ;;  %v2904_v18 = vld [vmem:[%s3609_s15 + $0x18] sm:$0xff]  }
 0x43c   : > { %2779 = vmatprep.subr.bf16.mxu1 %v2998_v9 }
 0x4ee   : > { %v1690_v20 = vpop.f32.mrf.mxu0 }
 0x4ef   : > { %v1834_v21 = vpack.c.bf16 %v1690_v20, %v1690_v20 }
 0x4f0   : > { %v2741_v23 = vpop.f32.mrf.mxu0 }
 0x4f1   : > { %2764 = vmatmul.mubr.msk.bf16.vlgmr.msra.gmra.mxu0 %vm1403_vm2, %v1834_v21 }
 0x4f2   : > { %v1693_v25 = vpop.f32.mrf.mxu0  ;;  %v1736_v26 = vpop.f32.mrf.mxu1  ;;  %2774 = vmatpush3.bf16.msra.mxu0 %v1938_v22  ;;  %2775 = vmatprep.mubr.msk.bf16.mxu0 %vm2999_vm1, %v2998_v9 }
 0x4f3   : > { %v1835_v27 = vpack.c.bf16 %v1736_v26, %v1736_v26  ;;  %2785 = vmatprep.subr.bf16.mxu0 %v2998_v9  ;;  %v2509_v26 = vld [vmem:[%s3606_s12] ss:$0 sm:$0xff] }
 0x4f4   : > { %v2742_v29 = vpop.f32.mrf.mxu0  ;;  %v2747_v30 = vpop.f32.mrf.mxu1 }
 0x4f5   : > { %2770 = vmatmul.mubr.msk.bf16.vlgmr.msra.gmra.mxu1 %vm1403_vm2, %v1835_v27  ;;  %v2906_v30 = vld [vmem:[%s3609_s15 + $0x8] sm:$0xff]  }
 0x4f6   : > { %v1739_v31 = vpop.f32.mrf.mxu1  ;;  %2780 = vmatpush3.bf16.msra.mxu1 %v1984_v28  ;;  %2781 = vmatprep.mubr.msk.bf16.mxu1 %vm2999_vm1, %v2998_v9 }
 0x4f7   : > { %v1782_v32 = vpop.f32.mrf.mxu0  ;;  %2793 = vmatprep.subr.bf16.mxu1 %v2998_v9  ;;  %v2907_v31 = vld [vmem:[%s3609_s15] sm:$0xff]  }
 0x4f8   : > { %v1836_v33 = vpack.c.bf16 %v1782_v32, %v1782_v32  ;;  %v2748_v34 = vpop.f32.mrf.mxu1  ;;  %v2908_v32 = vld [vmem:[%s3611_s17 + $0x38] sm:$0xff]  }
 0x4f9   : > { %v2753_v35 = vpop.f32.mrf.mxu0  ;;  %v2910_v34 = vld [vmem:[%s3611_s17 + $0x28] sm:$0xff]  }
 0x4fa   : > { %2776 = vmatmul.mubr.msk.bf16.vlgmr.msra.gmra.mxu0 %vm1403_vm2, %v1836_v33  ;;  %v1828_v36 = vpop.f32.mrf.mxu1  ;;  %v2909_v33 = vld [vmem:[%s3611_s17 + $0x30] sm:$0xff]   ;;  %v2911_v35 = vld [vmem:[%s3611_s17 + $0x20] sm:$0xff]  }
 0x4fb   : > { %v1785_v37 = vpop.f32.mrf.mxu0  ;;  %v1837_v38 = vpack.c.bf16 %v1828_v36, %v1828_v36  ;;  %2789 = vmatprep.mubr.msk.bf16.mxu0 %vm2999_vm1, %v2998_v9  ;;  %2786 = vmatpush3.bf16.msra.mxu0 %v2898_v13  ;;  %v2912_v36 = vld [vmem:[%s3611_s17 + $0x18] sm:$0xff]  }
 0x4fc   : > { %v2759_v39 = vpop.f32.mrf.mxu1  ;;  %2787 = vmatprep.subr.bf16.mxu0 %v2998_v9  ;;  %v2913_v37 = vld [vmem:[%s3611_s17 + $0x10] sm:$0xff]  }
 0x4fd   : > { %v2754_v40 = vpop.f32.mrf.mxu0  ;;  %2782 = vmatmul.mubr.msk.bf16.vlgmr.msra.gmra.mxu1 %vm1403_vm2, %v1837_v38  ;;  %v2510_v38 = vld [vmem:[%s3608_s14] ss:$0 sm:$0xff] }
 0x4fe   : > { %v1831_v41 = vpop.f32.mrf.mxu1  ;;  %2809 = vmatprep.mubr.msk.bf16.mxu1 %vm2999_vm1, %v2998_v9  ;;  %2794 = vmatpush3.bf16.msra.mxu1 %v2900_v14 }
 0x4ff   : > { %2795 = vmatprep.subr.bf16.mxu1 %v2998_v9 }
 0x500   : > { %v2760_v42 = vpop.f32.mrf.mxu1 }
 0x502   : > { %2796 = vmatpush3.bf16.msra.mxu1 %v2901_v15 }
 0x503   : > { %2797 = vmatprep.subr.bf16.mxu1 %v2998_v9 }
 0x506   : > { %2798 = vmatpush3.bf16.msra.mxu1 %v2902_v16 }
 0x507   : > { %2799 = vmatprep.subr.bf16.mxu1 %v2998_v9 }
 0x50a   : > { %2800 = vmatpush3.bf16.msra.mxu1 %v2903_v17 }
 0x50b   : > { %2801 = vmatprep.subr.bf16.mxu1 %v2998_v9 }
 0x50e   : > { %2802 = vmatpush3.bf16.msra.mxu1 %v2904_v18 }
 0x50f   : > { %2803 = vmatprep.subr.bf16.mxu1 %v2998_v9 }
 0x512   : > { %2804 = vmatpush3.bf16.msra.mxu1 %v2905_v19 }
 0x513   : > { %2805 = vmatprep.subr.bf16.mxu1 %v2998_v9 }
 0x516   : > { %2806 = vmatpush3.bf16.msra.mxu1 %v2906_v30 }
 0x517   : > { %2807 = vmatprep.subr.bf16.mxu1 %v2998_v9 }
 0x51a   : > { %2808 = vmatpush3.bf16.msra.mxu1 %v2907_v31 }
 0x5b1   : > { %v1882_v43 = vpop.f32.mrf.mxu0 }
 0x5b2   : > { %v2026_v51 = vsel %vm602_vm0, %v1882_v43, 0.0 }
 0x5b3   : > { %v2765_v44 = vpop.f32.mrf.mxu0 }
 0x5b5   : > { %v1885_v45 = vpop.f32.mrf.mxu0  ;;  %v1928_v46 = vpop.f32.mrf.mxu1 }
 0x5b6   : > { %v2027_v49 = vsel %vm602_vm0, %v1928_v46, 0.0  ;;  %v2914_v46 = vld [vmem:[%s3611_s17 + $0x8] sm:$0xff]  }
 0x5b7   : > { %v2766_v47 = vpop.f32.mrf.mxu0  ;;  %v2771_v48 = vpop.f32.mrf.mxu1  ;;  %v2028_v53 = vadd.f32 %v2027_v49, %v2026_v51 }
 0x5b8   : > { %v2915_v47 = vld [vmem:[%s3611_s17] sm:$0xff]  }
 0x5b9   : > { %v1931_v50 = vpop.f32.mrf.mxu1  ;;  %v2514_v48 = vld [vmem:[%s3610_s16] ss:$0 sm:$0xff] }
 0x5ba   : > { %v1974_v52 = vpop.f32.mrf.mxu0 }
 0x5bb   : > { %v2029_v54 = vsel %vm602_vm0, %v1974_v52, 0.0  ;;  %v2772_v55 = vpop.f32.mrf.mxu1 }
 0x5bc   : > { %v2777_v56 = vpop.f32.mrf.mxu0  ;;  %v2030_v57 = vadd.f32 %v2029_v54, %v2028_v53 }
 0x5bd   : > { %v2020_v58 = vpop.f32.mrf.mxu1 }
 0x5be   : > { %v1977_v59 = vpop.f32.mrf.mxu0  ;;  %v2031_v62 = vsel %vm602_vm0, %v2020_v58, 0.0 }
 0x5bf   : > { %v2032_v1 = vadd.f32 %v2031_v62, %v2030_v57  ;;  %v2783_v2 = vpop.f32.mrf.mxu1 }
 0x5c0   : > { %v2778_v3 = vpop.f32.mrf.mxu0 }
 0x5c1   : > { %v2040_v4 = vadd.f32 %v2507_v63, %v2032_v1  ;;  %v2023_v5 = vpop.f32.mrf.mxu1 }
 0x5c3   : > { %v2784_v6 = vpop.f32.mrf.mxu1  ;;  %v3452_v7 = vadd.f32 %v2040_v4, %v3154_v0  ;;  %v2899_v0 = vld [vmem:[%s3607_s13] sm:$0xff]  }
 0x5c4   : > { %2788 = vmatpush3.bf16.msra.mxu0 %v2899_v0 }
 0x5c5   : > { %v2044_v60 = vsel %vm602_vm0, %v3452_v7, 0.0  ;;  %2813 = vmatprep.subr.bf16.mxu0 %v2998_v9 }
 0x5c6   : > { %2045 = vadd.xlane.f32.xlu0 %v2044_v60 }
 0x64f   : > { %v2046_v8 = vpop.xlane.xlu0 %2045 }
 0x650   : > { %v2047_v10 = vmul.f32 0.03125, %v2046_v8 }
 0x652   : > { %v2048_v61 = vsub.f32 %v3452_v7, %v2047_v10 }
 0x654   : > { %v2049_v11 = vmul.f32 %v2048_v61, %v2048_v61 }
 0x656   : > { %v2050_v12 = vsel %vm602_vm0, %v2049_v11, 0.0 }
 0x657   : > { %2051 = vadd.xlane.f32.xlu1 %v2050_v12 }
 0x6e0   : > { %v2052_v20 = vpop.xlane.xlu1 %2051 }
 0x6e1   : > { %v2053_v21 = vmul.f32 0.03125, %v2052_v20 }
 0x6e3   : > { %v2054_v22 = vadd.f32 1e-05, %v2053_v21 }
 0x6e5   : > { %2934 = vrsqrt.f32 %v2054_v22 }
 0x6f2   : > { %v2935_v23 = vpop.eup %2934 }
 0x6f3   : > { %v2056_v25 = vmul.f32 %v2935_v23, %v2048_v61 }
 0x6f5   : > { %v2063_v27 = vmul.f32 %v2508_v24, %v2056_v25 }
 0x6f7   : > { %v2070_v28 = vadd.f32 %v2509_v26, %v2063_v27 }
 0x6f9   : > { %v2071_v29 = vpack.c.bf16 %v2070_v28, %v2070_v28 }
 0x6fb   : > { %2790 = vmatmul.mubr.msk.bf16.vlgmr.msra.gmra.mxu0 %vm602_vm0, %v2071_v29 }
 0x6fc   : > { %2829 = vmatprep.mubr.msk.bf16.mxu0 %vm2999_vm1, %v2998_v9  ;;  %2814 = vmatpush3.bf16.msra.mxu0 %v2908_v32 }
 0x6fd   : > { %2815 = vmatprep.subr.bf16.mxu0 %v2998_v9 }
 0x700   : > { %2816 = vmatpush3.bf16.msra.mxu0 %v2909_v33 }
 0x701   : > { %2817 = vmatprep.subr.bf16.mxu0 %v2998_v9 }
 0x704   : > { %2818 = vmatpush3.bf16.msra.mxu0 %v2910_v34 }
 0x705   : > { %2819 = vmatprep.subr.bf16.mxu0 %v2998_v9 }
 0x708   : > { %2820 = vmatpush3.bf16.msra.mxu0 %v2911_v35 }
 0x709   : > { %2821 = vmatprep.subr.bf16.mxu0 %v2998_v9 }
 0x70c   : > { %2822 = vmatpush3.bf16.msra.mxu0 %v2912_v36 }
 0x70d   : > { %2823 = vmatprep.subr.bf16.mxu0 %v2998_v9 }
 0x710   : > { %2824 = vmatpush3.bf16.msra.mxu0 %v2913_v37 }
 0x711   : > { %2825 = vmatprep.subr.bf16.mxu0 %v2998_v9 }
 0x714   : > { %2826 = vmatpush3.bf16.msra.mxu0 %v2914_v46 }
 0x715   : > { %2827 = vmatprep.subr.bf16.mxu0 %v2998_v9  ;;  %v2523_v9 = vld [vmem:[%s3612_s18] ss:$0 sm:$0xff] }
 0x718   : > { %2828 = vmatpush3.bf16.msra.mxu0 %v2915_v47 }
 0x7bb   : > { %v2132_v39 = vpop.f32.mrf.mxu0 }
 0x7bc   : > { %v2133_v40 = vadd.f32 %v2510_v38, %v2132_v39 }
 0x7bd   : > { %v2791_v41 = vpop.f32.mrf.mxu0 }
 0x7be   : > { %v2138_v42 = vmax.f32 %v2133_v40, 0.0 }
 0x7bf   : > { %v2135_v43 = vpop.f32.mrf.mxu0 }
 0x7c0   : > { %v2139_v44 = vpack.c.bf16 %v2138_v42, %v2138_v42 }
 0x7c1   : > { %v2792_v45 = vpop.f32.mrf.mxu0 }
 0x7c2   : > { %2810 = vmatmul.mubr.bf16.vlgmr.msra.gmra.mxu1 %v2139_v44 }
 0x882   : > { %v2245_v49 = vpop.f32.mrf.mxu1 }
 0x883   : > { %v2246_v50 = vadd.f32 %v2514_v48, %v2245_v49 }
 0x884   : > { %v2811_v51 = vpop.f32.mrf.mxu1 }
 0x885   : > { %v2251_v52 = vmax.f32 %v2246_v50, 0.0 }
 0x886   : > { %v2248_v53 = vpop.f32.mrf.mxu1 }
 0x887   : > { %v2252_v54 = vpack.c.bf16 %v2251_v52, %v2251_v52 }
 0x888   : > { %v2812_v55 = vpop.f32.mrf.mxu1 }
 0x889   : > { %2830 = vmatmul.mubr.bf16.vlgmr.msra.gmra.mxu0 %v2252_v54 }
 0x949   : > { %v2358_v56 = vpop.f32.mrf.mxu0 }
 0x94a   : > { %v2359_v57 = vadd.f32 %v2523_v9, %v2358_v56 }
 0x94b   : > { %v2831_v58 = vpop.f32.mrf.mxu0 }
 0x94c   : > { %v2364_v59 = vadd.f32 %v2359_v57, %v3452_v7 }
 0x94d   : > { %v2361_v62 = vpop.f32.mrf.mxu0 }
 0x94e   : > { %2365 = vst.msk [vmem:[%s593_s25] sm:$0xff] %vm602_vm0, %v2364_v59 }
 0x94f   : > { %v2832_v63 = vpop.f32.mrf.mxu0 }
 0x950   : > { %2949 = shalt.err (!%p2946_p3)
}
 0x951   : > { %s2950_s25 = scalar_lea.hbm %s3552_s28, 128  ;;  %s2954_s29 = scalar_lea.hbm %s3613_s19, 256 }
 0x952   : > { %p2951_p4 = scmp.ne.s32.totalorder %s3552_s28, %s2950_s25  ;;  %p2955_p9 = scmp.lt.s32.totalorder %s3552_s28, %s3613_s19 }
 0x953   : > { %p2956_p10 = scmp.lt.s32.totalorder %s2954_s29, %s2950_s25 }
 0x954   : > { %p2952_p7 = pnand %p2951_p4, %p3139_p5 }
 0x955   : > { %p2957_p11 = por %p2956_p10, %p2955_p9 }
 0x956   : > { %p2953_p8 = pneg %p2952_p7 }
 0x958   : > { %p2958_p12 = pnand %p2957_p11, %p2953_p8 }
 0x95a   : > { %2961 = shalt.err (!%p2958_p12)
}
 0x95b   : > { %2833 = dma.vmem_to_hbm [thread:$0]  (%p3139_p5), %s3554_s24, 128, %s3552_s28, %s2367_s1  }
 0x95c PF: > { %s3637_s26 = sld [smem:[#allocation5_spill]]  ;;  %p2839_p13 = scmp.ge.s32.totalorder %s2996_s21, 2 }
 0x95e   : > { %p2836_p0 = pnand %p2839_p13, %p3143_p6 }
 0x960   : > { %p2837_p1 = pneg %p2836_p0 }
 0x962   : > { %s2392_s20 = sand.u32 1, %s3637_s26  }
 0x963   : > { %s2393_s2 = scalar_lea.sflag [#allocation3], %s2392_s20 }
 0x964   : > { %2979 = dma.done.wait (%p2837_p1), %s2393_s2, 128  }
 0x965   : > { %2981 = vsyncadd (%p2837_p1), %s2393_s2, 4294967168  ;;  %s3639_s21 = sld [smem:[#allocation7_spill]]  ;;  %s3642_s0 = smov %s2988_s30 }
 0x966   : > { %s3640_s25 = sld [smem:[#allocation6_spill]] }
 0x967   : > { %s3641_s20 = sld [smem:[#allocation8_spill]] }
 0x96b   : > { %p29_p2 = scmp.ge.s32.totalorder %s3639_s21, 4  }
 0x96c   : > { %s3643_s30 = smov %s3640_s25 }
 0x96d   :  { %31 = sbr.rel (!%p29_p2) target bundleno = 8 (0x8), region = 131 }
 0x972   :  { %2398 = vsyncpa [#allocation3], 1 }
 0x973   :  { %2400 = vsyncpa [#allocation3 + $0x1], 1 }

</bundles_post_ra>
